<compile_context>
chip_gen: v6e
topology: v6e:2x2x1
jax: 0.10.0
libtpu: 0.0.40
codegen_flags: <defaults>
</compile_context>

<pallas_src>
import functools

import jax
import jax.numpy as jnp
from jax.experimental import pallas as pl
from jax.experimental.pallas import tpu as pltpu


def _round_up(x, m):
    return (x + m - 1) // m * m


# ---------------------------------------------------------------------------
# Kernel 1: phase-split conv (4x4, stride 2, pad 1) + BN shift + LeakyReLU
#
#   r_ref : (1, 4*Cin, Lin)  bf16   per-image phase tensor, flat (Ho+1,Wo+1)
#   wd_ref: (4, Cout, 4*Cin) bf16   one weight slab per 2x2 window offset
#   o_ref : (1, Cout, Lout)  bf16   flat (Ho+1,Wo+1) grid (garbage stripped
#                                   later by the next layer's relayout)
#
#   out[co, t] = leaky( sum_d  Wd[d] @ r[:, t + off_d]  + shift[co] )
#   with off_d in {0, 1, Wo+1, Wo+2}  (flat-index shifts inside one image).
# ---------------------------------------------------------------------------
def _conv_phase_kernel(wd_ref, shift_ref, r_ref, o_ref, *, offs):
    cout = o_ref.shape[1]
    lout = o_ref.shape[2]
    acc = jnp.zeros((cout, lout), jnp.float32)
    for d, off in enumerate(offs):
        # Lane-shifted view of the phase block (static offset, stays in VMEM).
        slab = r_ref[0, :, pl.ds(off, lout)]          # (4*Cin, Lout) bf16
        acc = acc + jnp.dot(wd_ref[d], slab, preferred_element_type=jnp.float32)
    y = acc + shift_ref[...]                          # f32 epilogue (BN shift)
    y = jnp.where(y > 0, y, 0.2 * y)                  # LeakyReLU(0.2)
    o_ref[0] = y.astype(o_ref.dtype)


def conv4x4_s2(x, wd, shift):
    """x: (N, Cin, H, W) bf16; wd: (4, Cout, 4*Cin) bf16; shift: (Cout, 1) f32."""
    n, c, h, w = x.shape
    ho, wo = h // 2, w // 2
    lp = (ho + 1) * (wo + 1)                 # per-image flat length incl. halo
    lout = _round_up(lp, 128)                # lane-dense output width
    lin = lout + _round_up(wo + 2, 128)      # room for the largest tap shift
    cout = wd.shape[1]
    assert wd.shape[2] == 4 * c

    # --- one-time space-to-depth phase split (pure relayout, ~2x act bytes) --
    xp = jnp.pad(x, ((0, 0), (0, 0), (1, 1), (1, 1)))          # zero pad=1
    r = xp.reshape(n, c, ho + 1, 2, wo + 1, 2)                 # (n,c,hh,pi,ww,pj)
    r = r.transpose(0, 3, 5, 1, 2, 4)                          # (n,pi,pj,c,hh,ww)
    r = r.reshape(n, 4 * c, lp)
    r = jnp.pad(r, ((0, 0), (0, 0), (0, lin - lp)))            # (n, 4c, Lin)

    offs = (0, 1, wo + 1, wo + 2)
    kernel = functools.partial(_conv_phase_kernel, offs=offs)

    o = pl.pallas_call(
        kernel,
        out_shape=jax.ShapeDtypeStruct((n, cout, lout), jnp.bfloat16),
        grid=(n,),
        in_specs=[
            pl.BlockSpec((4, cout, 4 * c), lambda i: (0, 0, 0)),   # weights: resident
            pl.BlockSpec((cout, 1), lambda i: (0, 0)),             # shift: resident
            pl.BlockSpec((1, 4 * c, lin), lambda i: (i, 0, 0)),    # per-image phases
        ],
        out_specs=pl.BlockSpec((1, cout, lout), lambda i: (i, 0, 0)),
        compiler_params=pltpu.CompilerParams(
            dimension_semantics=("parallel",),
            vmem_limit_bytes=32 * 1024 * 1024,
        ),
    )(wd, shift, r)

    # Strip the halo row/col + padding (fused by XLA with the next layer's
    # phase-split relayout).
    o = o[:, :, :lp].reshape(n, cout, ho + 1, wo + 1)[:, :, :ho, :wo]
    return o                                                   # (N, Cout, Ho, Wo) bf16


# ---------------------------------------------------------------------------
# Kernel 2: fused FC tail  (fc1 -> relu -> fc2 -> relu -> fc3 -> sigmoid)
# bf16 operands into the MXU, f32 bias/activations; dropout = identity (eval).
# ---------------------------------------------------------------------------
def _fc_tail_kernel(x_ref, w1_ref, b1_ref, w2_ref, b2_ref, w3_ref, b3_ref, o_ref):
    h = jnp.dot(x_ref[...], w1_ref[...], preferred_element_type=jnp.float32)
    h = jnp.maximum(h + b1_ref[...], 0.0)
    h = jnp.dot(h.astype(w2_ref.dtype), w2_ref[...], preferred_element_type=jnp.float32)
    h = jnp.maximum(h + b2_ref[...], 0.0)
    h = jnp.dot(h.astype(w3_ref.dtype), w3_ref[...], preferred_element_type=jnp.float32)
    o_ref[...] = jax.nn.sigmoid(h + b3_ref[...]).astype(o_ref.dtype)


def fc_tail(x2d, w1, b1, w2, b2, w3, b3):
    n, flat = x2d.shape
    d1 = w1.shape[1]
    d2 = w2.shape[1]
    n_t = 128 if (n % 128 == 0) else n        # batch-tiled when N is large
    return pl.pallas_call(
        _fc_tail_kernel,
        out_shape=jax.ShapeDtypeStruct((n, 1), jnp.float32),
        grid=(n // n_t,),
        in_specs=[
            pl.BlockSpec((n_t, flat), lambda i: (i, 0)),
            pl.BlockSpec((flat, d1), lambda i: (0, 0)),
            pl.BlockSpec((1, d1), lambda i: (0, 0)),
            pl.BlockSpec((d1, d2), lambda i: (0, 0)),
            pl.BlockSpec((1, d2), lambda i: (0, 0)),
            pl.BlockSpec((d2, 1), lambda i: (0, 0)),
            pl.BlockSpec((1, 1), lambda i: (0, 0)),
        ],
        out_specs=pl.BlockSpec((n_t, 1), lambda i: (i, 0)),
        compiler_params=pltpu.CompilerParams(dimension_semantics=("parallel",)),
    )(x2d, w1, b1, w2, b2, w3, b3)


# ---------------------------------------------------------------------------
# Parameter construction (deterministic, synthetic; BN scale folded into W)
# ---------------------------------------------------------------------------
def _conv_params(key, cout, cin, batch_norm):
    kw, kb = jax.random.split(key)
    w = 0.15 * jax.random.normal(kw, (cout, cin, 4, 4), dtype=jnp.float32)
    if batch_norm:
        k1, k2, k3, k4 = jax.random.split(kb, 4)
        gamma = 1.0 + 0.1 * jax.random.normal(k1, (cout,), jnp.float32)
        beta = 0.1 * jax.random.normal(k2, (cout,), jnp.float32)
        mean = 0.1 * jax.random.normal(k3, (cout,), jnp.float32)
        var = 1.0 + 0.5 * jax.random.uniform(k4, (cout,), jnp.float32)
        scale = gamma * jax.lax.rsqrt(var + 1e-5)
        shift = beta - mean * scale
    else:
        scale = jnp.ones((cout,), jnp.float32)
        shift = jnp.zeros((cout,), jnp.float32)
    w_s = (w * scale[:, None, None, None]).astype(jnp.bfloat16)   # bf16 source of truth
    # Rearrange to (offset d, Cout, (phase, cin)):  i = 2*di + pi, j = 2*dj + pj.
    wr = w_s.reshape(cout, cin, 2, 2, 2, 2)              # (co, c, di, pi, dj, pj)
    wd = wr.transpose(2, 4, 0, 3, 5, 1).reshape(4, cout, 4 * cin)
    return {
        "wd": wd,                                        # (4, Cout, 4*Cin) bf16
        "shift": shift.reshape(cout, 1).astype(jnp.float32),
        "w_oihw": w_s.astype(jnp.float32),               # for the f32 reference
    }


def make_params(key, conv_dim, img_size):
    assert img_size % 16 == 0
    cd = conv_dim
    keys = jax.random.split(key, 10)

    def nrm(k, shape, s):
        return s * jax.random.normal(k, shape, dtype=jnp.float32)

    p = {}
    p["conv1"] = _conv_params(keys[0], cd, 3, batch_norm=False)
    p["conv2"] = _conv_params(keys[1], 2 * cd, cd, batch_norm=True)
    p["conv3"] = _conv_params(keys[2], 4 * cd, 2 * cd, batch_norm=True)
    p["conv4"] = _conv_params(keys[3], 4 * cd, 4 * cd, batch_norm=True)
    flat = 4 * cd * (img_size // 16) * (img_size // 16)
    # Linear weights stored as (in, out); row order (c, h, w) matches PyTorch view.
    p["fc1"] = {"w": nrm(keys[4], (flat, 2 * cd), 0.05).astype(jnp.bfloat16),
                "b": nrm(keys[5], (1, 2 * cd), 0.1)}
    p["fc2"] = {"w": nrm(keys[6], (2 * cd, cd), 0.1).astype(jnp.bfloat16),
                "b": nrm(keys[7], (1, cd), 0.1)}
    p["fc3"] = {"w": nrm(keys[8], (cd, 1), 0.1).astype(jnp.bfloat16),
                "b": nrm(keys[9], (1, 1), 0.1)}
    return p


# ---------------------------------------------------------------------------
# Forward pass (batch-major NCHW end-to-end; flatten matches x.view(-1, C*H*W))
# ---------------------------------------------------------------------------
def conv_stack(x_nchw, params):
    h = x_nchw.astype(jnp.bfloat16)          # bf16 at entry, before any pad
    for name in ("conv1", "conv2", "conv3", "conv4"):
        p = params[name]
        h = conv4x4_s2(h, p["wd"], p["shift"])   # conv + BN shift + LeakyReLU
        # Dropout(p=0.38) is identity at inference.
    return h                                  # (N, 4cd, img/16, img/16) bf16


def discriminator_forward(x_nchw, params):
    h = conv_stack(x_nchw, params)
    n = h.shape[0]
    x2d = h.reshape(n, -1)                    # (N, C*H*W) in (c, h, w) order, bf16
    return fc_tail(
        x2d,
        params["fc1"]["w"], params["fc1"]["b"],
        params["fc2"]["w"], params["fc2"]["b"],
        params["fc3"]["w"], params["fc3"]["b"],
    )                                         # (N, 1) sigmoid probabilities


# ---------------------------------------------------------------------------
# Pure-JAX f32 reference (same bf16-rounded weights) for a tolerance check
# ---------------------------------------------------------------------------
def reference_forward(x_nchw, params):
    h = x_nchw.astype(jnp.float32)
    for name in ("conv1", "conv2", "conv3", "conv4"):
        p = params[name]
        h = jax.lax.conv_general_dilated(
            h, p["w_oihw"], window_strides=(2, 2), padding=((1, 1), (1, 1)),
            dimension_numbers=("NCHW", "OIHW", "NCHW"))
        h = h + p["shift"].reshape(1, -1, 1, 1)
        h = jnp.where(h > 0, h, 0.2 * h)
    feats = h
    z = h.reshape(h.shape[0], -1)
    z = jnp.maximum(z @ params["fc1"]["w"].astype(jnp.float32) + params["fc1"]["b"], 0.0)
    z = jnp.maximum(z @ params["fc2"]["w"].astype(jnp.float32) + params["fc2"]["b"], 0.0)
    z = z @ params["fc3"]["w"].astype(jnp.float32) + params["fc3"]["b"]
    return jax.nn.sigmoid(z), feats


# ---------------------------------------------------------------------------
if __name__ == "__main__":
    # Small shapes consistent with the module (img divisible by 16 so the
    # 4*conv_dim*(img/16)^2 flatten matches fc1).  batch=4 -> 4 parallel grid
    # steps per conv layer (>=2 for v7x megacore).
    CONV_DIM = 8
    IMG = 32
    BATCH = 4

    key = jax.random.PRNGKey(0)
    pkey, xkey = jax.random.split(key)
    params = make_params(pkey, CONV_DIM, IMG)
    x = jax.random.normal(xkey, (BATCH, 3, IMG, IMG), dtype=jnp.float32)

    fwd = jax.jit(discriminator_forward)
    out = jax.block_until_ready(fwd(x, params))
    assert out.shape == (BATCH, 1)
    assert bool(jnp.all(jnp.isfinite(out)))
    assert bool(jnp.all((out >= 0.0) & (out <= 1.0)))

    # Correctness vs. f32 XLA reference (bf16 activations -> loose tolerance).
    feats = jax.block_until_ready(jax.jit(conv_stack)(x, params)).astype(jnp.float32)
    ref_out, ref_feats = jax.jit(reference_forward)(x, params)
    assert bool(jnp.allclose(feats, ref_feats, rtol=0.2, atol=0.2)), "conv stack mismatch"
    assert bool(jnp.allclose(out, ref_out, atol=0.05)), "final output mismatch"

    print("KERNEL_OK")
</pallas_src>

<mosaic_0001>
module attributes {stable_mosaic.version = 11 : i64} {
  func.func @_conv_phase_kernel(%arg0: i32, %arg1: memref<4x8x12xbf16, #tpu.memory_space<vmem>>, %arg2: memref<8x1xf32, #tpu.memory_space<vmem>>, %arg3: memref<1x12x512xbf16, #tpu.memory_space<vmem>>, %arg4: memref<1x8x384xbf16, #tpu.memory_space<vmem>>) attributes {dimension_semantics = [#tpu.dimension_semantics<parallel>], iteration_bounds = array<i64: 4>, scalar_prefetch = 0 : i64, scratch_operands = 0 : i64, tpu.core_type = #tpu.core_type<tc>, window_params = [{pipeline_mode = #tpu.pipeline_mode<synchronous>, transform_indices = @transform_0, window_bounds = array<i64: 4, 8, 12>}, {pipeline_mode = #tpu.pipeline_mode<synchronous>, transform_indices = @transform_1, window_bounds = array<i64: 8, 1>}, {transform_indices = @transform_2, window_bounds = array<i64: 1, 12, 512>}, {transform_indices = @transform_3, window_bounds = array<i64: 1, 8, 384>}]} {
    %cst = arith.constant 0.000000e+00 : f32
    %0 = vector.broadcast %cst : f32 to vector<8x384xf32>
    %c0 = arith.constant 0 : index
    %c0_0 = arith.constant 0 : index
    %c0_1 = arith.constant 0 : index
    %1 = vector.load %arg3[%c0, %c0_0, %c0_1] : memref<1x12x512xbf16, #tpu.memory_space<vmem>>, vector<1x12x384xbf16>
    %2 = vector.shape_cast %1 : vector<1x12x384xbf16> to vector<12x384xbf16>
    %c0_2 = arith.constant 0 : index
    %c0_3 = arith.constant 0 : index
    %c0_4 = arith.constant 0 : index
    %3 = vector.load %arg1[%c0_2, %c0_3, %c0_4] : memref<4x8x12xbf16, #tpu.memory_space<vmem>>, vector<1x8x12xbf16>
    %4 = vector.shape_cast %3 : vector<1x8x12xbf16> to vector<8x12xbf16>
    %cst_5 = arith.constant dense<0.000000e+00> : vector<8x384xf32>
    %5 = tpu.matmul %4, %2, %cst_5 {dimension_numbers = #tpu.dot_dimension_numbers<[1], [0], [0], [1], [0, 0, 1, 1], [], []>} : vector<8x12xbf16>, vector<12x384xbf16>, vector<8x384xf32> -> vector<8x384xf32>
    %6 = arith.addf %0, %5 : vector<8x384xf32>
    %c0_6 = arith.constant 0 : index
    %c0_7 = arith.constant 0 : index
    %c1 = arith.constant 1 : index
    %7 = vector.load %arg3[%c0_6, %c0_7, %c1] : memref<1x12x512xbf16, #tpu.memory_space<vmem>>, vector<1x12x384xbf16>
    %8 = vector.shape_cast %7 : vector<1x12x384xbf16> to vector<12x384xbf16>
    %c1_8 = arith.constant 1 : index
    %c0_9 = arith.constant 0 : index
    %c0_10 = arith.constant 0 : index
    %9 = vector.load %arg1[%c1_8, %c0_9, %c0_10] : memref<4x8x12xbf16, #tpu.memory_space<vmem>>, vector<1x8x12xbf16>
    %10 = vector.shape_cast %9 : vector<1x8x12xbf16> to vector<8x12xbf16>
    %cst_11 = arith.constant dense<0.000000e+00> : vector<8x384xf32>
    %11 = tpu.matmul %10, %8, %cst_11 {dimension_numbers = #tpu.dot_dimension_numbers<[1], [0], [0], [1], [0, 0, 1, 1], [], []>} : vector<8x12xbf16>, vector<12x384xbf16>, vector<8x384xf32> -> vector<8x384xf32>
    %12 = arith.addf %6, %11 : vector<8x384xf32>
    %c0_12 = arith.constant 0 : index
    %c0_13 = arith.constant 0 : index
    %c17 = arith.constant 17 : index
    %13 = vector.load %arg3[%c0_12, %c0_13, %c17] : memref<1x12x512xbf16, #tpu.memory_space<vmem>>, vector<1x12x384xbf16>
    %14 = vector.shape_cast %13 : vector<1x12x384xbf16> to vector<12x384xbf16>
    %c2 = arith.constant 2 : index
    %c0_14 = arith.constant 0 : index
    %c0_15 = arith.constant 0 : index
    %15 = vector.load %arg1[%c2, %c0_14, %c0_15] : memref<4x8x12xbf16, #tpu.memory_space<vmem>>, vector<1x8x12xbf16>
    %16 = vector.shape_cast %15 : vector<1x8x12xbf16> to vector<8x12xbf16>
    %cst_16 = arith.constant dense<0.000000e+00> : vector<8x384xf32>
    %17 = tpu.matmul %16, %14, %cst_16 {dimension_numbers = #tpu.dot_dimension_numbers<[1], [0], [0], [1], [0, 0, 1, 1], [], []>} : vector<8x12xbf16>, vector<12x384xbf16>, vector<8x384xf32> -> vector<8x384xf32>
    %18 = arith.addf %12, %17 : vector<8x384xf32>
    %c0_17 = arith.constant 0 : index
    %c0_18 = arith.constant 0 : index
    %c18 = arith.constant 18 : index
    %19 = vector.load %arg3[%c0_17, %c0_18, %c18] : memref<1x12x512xbf16, #tpu.memory_space<vmem>>, vector<1x12x384xbf16>
    %20 = vector.shape_cast %19 : vector<1x12x384xbf16> to vector<12x384xbf16>
    %c3 = arith.constant 3 : index
    %c0_19 = arith.constant 0 : index
    %c0_20 = arith.constant 0 : index
    %21 = vector.load %arg1[%c3, %c0_19, %c0_20] : memref<4x8x12xbf16, #tpu.memory_space<vmem>>, vector<1x8x12xbf16>
    %22 = vector.shape_cast %21 : vector<1x8x12xbf16> to vector<8x12xbf16>
    %cst_21 = arith.constant dense<0.000000e+00> : vector<8x384xf32>
    %23 = tpu.matmul %22, %20, %cst_21 {dimension_numbers = #tpu.dot_dimension_numbers<[1], [0], [0], [1], [0, 0, 1, 1], [], []>} : vector<8x12xbf16>, vector<12x384xbf16>, vector<8x384xf32> -> vector<8x384xf32>
    %24 = arith.addf %18, %23 : vector<8x384xf32>
    %c0_22 = arith.constant 0 : index
    %c0_23 = arith.constant 0 : index
    %25 = vector.load %arg2[%c0_22, %c0_23] : memref<8x1xf32, #tpu.memory_space<vmem>>, vector<8x1xf32>
    %26 = vector.broadcast %25 : vector<8x1xf32> to vector<8x384xf32>
    %27 = arith.addf %24, %26 : vector<8x384xf32>
    %cst_24 = arith.constant 0.000000e+00 : f32
    %28 = vector.broadcast %cst_24 : f32 to vector<8x384xf32>
    %29 = arith.cmpf ogt, %27, %28 : vector<8x384xf32>
    %cst_25 = arith.constant 2.000000e-01 : f32
    %30 = vector.broadcast %cst_25 : f32 to vector<8x384xf32>
    %31 = arith.mulf %30, %27 : vector<8x384xf32>
    %32 = arith.select %29, %27, %31 : vector<8x384xi1>, vector<8x384xf32>
    %33 = arith.truncf %32 : vector<8x384xf32> to vector<8x384xbf16>
    %c0_26 = arith.constant 0 : index
    %c0_27 = arith.constant 0 : index
    %c0_28 = arith.constant 0 : index
    %34 = vector.load %arg4[%c0_26, %c0_27, %c0_28] : memref<1x8x384xbf16, #tpu.memory_space<vmem>>, vector<1x8x384xbf16>
    %35 = vector.shape_cast %34 : vector<1x8x384xbf16> to vector<8x384xbf16>
    %36 = vector.shape_cast %33 : vector<8x384xbf16> to vector<1x8x384xbf16>
    tpu.vector_store %arg4[%c0_26, %c0_27, %c0_28], %36 {strides = array<i32>} : memref<1x8x384xbf16, #tpu.memory_space<vmem>>, vector<1x8x384xbf16>,
    return
  }
  func.func @transform_0(%arg0: i32) -> (i32, i32, i32) {
    %c0_i32 = arith.constant 0 : i32
    %c0_i32_0 = arith.constant 0 : i32
    %c0_i32_1 = arith.constant 0 : i32
    %c0_i32_2 = arith.constant 0 : i32
    return %c0_i32, %c0_i32_0, %c0_i32_1 : i32, i32, i32
  }
  func.func @transform_1(%arg0: i32) -> (i32, i32) {
    %c0_i32 = arith.constant 0 : i32
    %c0_i32_0 = arith.constant 0 : i32
    %c0_i32_1 = arith.constant 0 : i32
    return %c0_i32, %c0_i32_0 : i32, i32
  }
  func.func @transform_2(%arg0: i32) -> (i32, i32, i32) {
    %c0_i32 = arith.constant 0 : i32
    %c0_i32_0 = arith.constant 0 : i32
    %c0_i32_1 = arith.constant 0 : i32
    return %arg0, %c0_i32, %c0_i32_0 : i32, i32, i32
  }
  func.func @transform_3(%arg0: i32) -> (i32, i32, i32) {
    %c0_i32 = arith.constant 0 : i32
    %c0_i32_0 = arith.constant 0 : i32
    %c0_i32_1 = arith.constant 0 : i32
    return %arg0, %c0_i32, %c0_i32_0 : i32, i32, i32
  }
}

module attributes {stable_mosaic.version = 11 : i64} {
  func.func @_conv_phase_kernel(%arg0: i32, %arg1: memref<4x16x32xbf16, #tpu.memory_space<vmem>>, %arg2: memref<16x1xf32, #tpu.memory_space<vmem>>, %arg3: memref<1x32x256xbf16, #tpu.memory_space<vmem>>, %arg4: memref<1x16x128xbf16, #tpu.memory_space<vmem>>) attributes {dimension_semantics = [#tpu.dimension_semantics<parallel>], iteration_bounds = array<i64: 4>, scalar_prefetch = 0 : i64, scratch_operands = 0 : i64, tpu.core_type = #tpu.core_type<tc>, window_params = [{pipeline_mode = #tpu.pipeline_mode<synchronous>, transform_indices = @transform_0, window_bounds = array<i64: 4, 16, 32>}, {pipeline_mode = #tpu.pipeline_mode<synchronous>, transform_indices = @transform_1, window_bounds = array<i64: 16, 1>}, {transform_indices = @transform_2, window_bounds = array<i64: 1, 32, 256>}, {transform_indices = @transform_3, window_bounds = array<i64: 1, 16, 128>}]} {
    %cst = arith.constant 0.000000e+00 : f32
    %0 = vector.broadcast %cst : f32 to vector<16x128xf32>
    %c0 = arith.constant 0 : index
    %c0_0 = arith.constant 0 : index
    %c0_1 = arith.constant 0 : index
    %1 = vector.load %arg3[%c0, %c0_0, %c0_1] : memref<1x32x256xbf16, #tpu.memory_space<vmem>>, vector<1x32x128xbf16>
    %2 = vector.shape_cast %1 : vector<1x32x128xbf16> to vector<32x128xbf16>
    %c0_2 = arith.constant 0 : index
    %c0_3 = arith.constant 0 : index
    %c0_4 = arith.constant 0 : index
    %3 = vector.load %arg1[%c0_2, %c0_3, %c0_4] : memref<4x16x32xbf16, #tpu.memory_space<vmem>>, vector<1x16x32xbf16>
    %4 = vector.shape_cast %3 : vector<1x16x32xbf16> to vector<16x32xbf16>
    %cst_5 = arith.constant dense<0.000000e+00> : vector<16x128xf32>
    %5 = tpu.matmul %4, %2, %cst_5 {dimension_numbers = #tpu.dot_dimension_numbers<[1], [0], [0], [1], [0, 0, 1, 1], [], []>} : vector<16x32xbf16>, vector<32x128xbf16>, vector<16x128xf32> -> vector<16x128xf32>
    %6 = arith.addf %0, %5 : vector<16x128xf32>
    %c0_6 = arith.constant 0 : index
    %c0_7 = arith.constant 0 : index
    %c1 = arith.constant 1 : index
    %7 = vector.load %arg3[%c0_6, %c0_7, %c1] : memref<1x32x256xbf16, #tpu.memory_space<vmem>>, vector<1x32x128xbf16>
    %8 = vector.shape_cast %7 : vector<1x32x128xbf16> to vector<32x128xbf16>
    %c1_8 = arith.constant 1 : index
    %c0_9 = arith.constant 0 : index
    %c0_10 = arith.constant 0 : index
    %9 = vector.load %arg1[%c1_8, %c0_9, %c0_10] : memref<4x16x32xbf16, #tpu.memory_space<vmem>>, vector<1x16x32xbf16>
    %10 = vector.shape_cast %9 : vector<1x16x32xbf16> to vector<16x32xbf16>
    %cst_11 = arith.constant dense<0.000000e+00> : vector<16x128xf32>
    %11 = tpu.matmul %10, %8, %cst_11 {dimension_numbers = #tpu.dot_dimension_numbers<[1], [0], [0], [1], [0, 0, 1, 1], [], []>} : vector<16x32xbf16>, vector<32x128xbf16>, vector<16x128xf32> -> vector<16x128xf32>
    %12 = arith.addf %6, %11 : vector<16x128xf32>
    %c0_12 = arith.constant 0 : index
    %c0_13 = arith.constant 0 : index
    %c9 = arith.constant 9 : index
    %13 = vector.load %arg3[%c0_12, %c0_13, %c9] : memref<1x32x256xbf16, #tpu.memory_space<vmem>>, vector<1x32x128xbf16>
    %14 = vector.shape_cast %13 : vector<1x32x128xbf16> to vector<32x128xbf16>
    %c2 = arith.constant 2 : index
    %c0_14 = arith.constant 0 : index
    %c0_15 = arith.constant 0 : index
    %15 = vector.load %arg1[%c2, %c0_14, %c0_15] : memref<4x16x32xbf16, #tpu.memory_space<vmem>>, vector<1x16x32xbf16>
    %16 = vector.shape_cast %15 : vector<1x16x32xbf16> to vector<16x32xbf16>
    %cst_16 = arith.constant dense<0.000000e+00> : vector<16x128xf32>
    %17 = tpu.matmul %16, %14, %cst_16 {dimension_numbers = #tpu.dot_dimension_numbers<[1], [0], [0], [1], [0, 0, 1, 1], [], []>} : vector<16x32xbf16>, vector<32x128xbf16>, vector<16x128xf32> -> vector<16x128xf32>
    %18 = arith.addf %12, %17 : vector<16x128xf32>
    %c0_17 = arith.constant 0 : index
    %c0_18 = arith.constant 0 : index
    %c10 = arith.constant 10 : index
    %19 = vector.load %arg3[%c0_17, %c0_18, %c10] : memref<1x32x256xbf16, #tpu.memory_space<vmem>>, vector<1x32x128xbf16>
    %20 = vector.shape_cast %19 : vector<1x32x128xbf16> to vector<32x128xbf16>
    %c3 = arith.constant 3 : index
    %c0_19 = arith.constant 0 : index
    %c0_20 = arith.constant 0 : index
    %21 = vector.load %arg1[%c3, %c0_19, %c0_20] : memref<4x16x32xbf16, #tpu.memory_space<vmem>>, vector<1x16x32xbf16>
    %22 = vector.shape_cast %21 : vector<1x16x32xbf16> to vector<16x32xbf16>
    %cst_21 = arith.constant dense<0.000000e+00> : vector<16x128xf32>
    %23 = tpu.matmul %22, %20, %cst_21 {dimension_numbers = #tpu.dot_dimension_numbers<[1], [0], [0], [1], [0, 0, 1, 1], [], []>} : vector<16x32xbf16>, vector<32x128xbf16>, vector<16x128xf32> -> vector<16x128xf32>
    %24 = arith.addf %18, %23 : vector<16x128xf32>
    %c0_22 = arith.constant 0 : index
    %c0_23 = arith.constant 0 : index
    %25 = vector.load %arg2[%c0_22, %c0_23] : memref<16x1xf32, #tpu.memory_space<vmem>>, vector<16x1xf32>
    %26 = vector.broadcast %25 : vector<16x1xf32> to vector<16x128xf32>
    %27 = arith.addf %24, %26 : vector<16x128xf32>
    %cst_24 = arith.constant 0.000000e+00 : f32
    %28 = vector.broadcast %cst_24 : f32 to vector<16x128xf32>
    %29 = arith.cmpf ogt, %27, %28 : vector<16x128xf32>
    %cst_25 = arith.constant 2.000000e-01 : f32
    %30 = vector.broadcast %cst_25 : f32 to vector<16x128xf32>
    %31 = arith.mulf %30, %27 : vector<16x128xf32>
    %32 = arith.select %29, %27, %31 : vector<16x128xi1>, vector<16x128xf32>
    %33 = arith.truncf %32 : vector<16x128xf32> to vector<16x128xbf16>
    %c0_26 = arith.constant 0 : index
    %c0_27 = arith.constant 0 : index
    %c0_28 = arith.constant 0 : index
    %34 = vector.load %arg4[%c0_26, %c0_27, %c0_28] : memref<1x16x128xbf16, #tpu.memory_space<vmem>>, vector<1x16x128xbf16>
    %35 = vector.shape_cast %34 : vector<1x16x128xbf16> to vector<16x128xbf16>
    %36 = vector.shape_cast %33 : vector<16x128xbf16> to vector<1x16x128xbf16>
    tpu.vector_store %arg4[%c0_26, %c0_27, %c0_28], %36 {strides = array<i32>} : memref<1x16x128xbf16, #tpu.memory_space<vmem>>, vector<1x16x128xbf16>,
    return
  }
  func.func @transform_0(%arg0: i32) -> (i32, i32, i32) {
    %c0_i32 = arith.constant 0 : i32
    %c0_i32_0 = arith.constant 0 : i32
    %c0_i32_1 = arith.constant 0 : i32
    %c0_i32_2 = arith.constant 0 : i32
    return %c0_i32, %c0_i32_0, %c0_i32_1 : i32, i32, i32
  }
  func.func @transform_1(%arg0: i32) -> (i32, i32) {
    %c0_i32 = arith.constant 0 : i32
    %c0_i32_0 = arith.constant 0 : i32
    %c0_i32_1 = arith.constant 0 : i32
    return %c0_i32, %c0_i32_0 : i32, i32
  }
  func.func @transform_2(%arg0: i32) -> (i32, i32, i32) {
    %c0_i32 = arith.constant 0 : i32
    %c0_i32_0 = arith.constant 0 : i32
    %c0_i32_1 = arith.constant 0 : i32
    return %arg0, %c0_i32, %c0_i32_0 : i32, i32, i32
  }
  func.func @transform_3(%arg0: i32) -> (i32, i32, i32) {
    %c0_i32 = arith.constant 0 : i32
    %c0_i32_0 = arith.constant 0 : i32
    %c0_i32_1 = arith.constant 0 : i32
    return %arg0, %c0_i32, %c0_i32_0 : i32, i32, i32
  }
}

module attributes {stable_mosaic.version = 11 : i64} {
  func.func @_conv_phase_kernel(%arg0: i32, %arg1: memref<4x32x64xbf16, #tpu.memory_space<vmem>>, %arg2: memref<32x1xf32, #tpu.memory_space<vmem>>, %arg3: memref<1x64x256xbf16, #tpu.memory_space<vmem>>, %arg4: memref<1x32x128xbf16, #tpu.memory_space<vmem>>) attributes {dimension_semantics = [#tpu.dimension_semantics<parallel>], iteration_bounds = array<i64: 4>, scalar_prefetch = 0 : i64, scratch_operands = 0 : i64, tpu.core_type = #tpu.core_type<tc>, window_params = [{pipeline_mode = #tpu.pipeline_mode<synchronous>, transform_indices = @transform_0, window_bounds = array<i64: 4, 32, 64>}, {pipeline_mode = #tpu.pipeline_mode<synchronous>, transform_indices = @transform_1, window_bounds = array<i64: 32, 1>}, {transform_indices = @transform_2, window_bounds = array<i64: 1, 64, 256>}, {transform_indices = @transform_3, window_bounds = array<i64: 1, 32, 128>}]} {
    %cst = arith.constant 0.000000e+00 : f32
    %0 = vector.broadcast %cst : f32 to vector<32x128xf32>
    %c0 = arith.constant 0 : index
    %c0_0 = arith.constant 0 : index
    %c0_1 = arith.constant 0 : index
    %1 = vector.load %arg3[%c0, %c0_0, %c0_1] : memref<1x64x256xbf16, #tpu.memory_space<vmem>>, vector<1x64x128xbf16>
    %2 = vector.shape_cast %1 : vector<1x64x128xbf16> to vector<64x128xbf16>
    %c0_2 = arith.constant 0 : index
    %c0_3 = arith.constant 0 : index
    %c0_4 = arith.constant 0 : index
    %3 = vector.load %arg1[%c0_2, %c0_3, %c0_4] : memref<4x32x64xbf16, #tpu.memory_space<vmem>>, vector<1x32x64xbf16>
    %4 = vector.shape_cast %3 : vector<1x32x64xbf16> to vector<32x64xbf16>
    %cst_5 = arith.constant dense<0.000000e+00> : vector<32x128xf32>
    %5 = tpu.matmul %4, %2, %cst_5 {dimension_numbers = #tpu.dot_dimension_numbers<[1], [0], [0], [1], [0, 0, 1, 1], [], []>} : vector<32x64xbf16>, vector<64x128xbf16>, vector<32x128xf32> -> vector<32x128xf32>
    %6 = arith.addf %0, %5 : vector<32x128xf32>
    %c0_6 = arith.constant 0 : index
    %c0_7 = arith.constant 0 : index
    %c1 = arith.constant 1 : index
    %7 = vector.load %arg3[%c0_6, %c0_7, %c1] : memref<1x64x256xbf16, #tpu.memory_space<vmem>>, vector<1x64x128xbf16>
    %8 = vector.shape_cast %7 : vector<1x64x128xbf16> to vector<64x128xbf16>
    %c1_8 = arith.constant 1 : index
    %c0_9 = arith.constant 0 : index
    %c0_10 = arith.constant 0 : index
    %9 = vector.load %arg1[%c1_8, %c0_9, %c0_10] : memref<4x32x64xbf16, #tpu.memory_space<vmem>>, vector<1x32x64xbf16>
    %10 = vector.shape_cast %9 : vector<1x32x64xbf16> to vector<32x64xbf16>
    %cst_11 = arith.constant dense<0.000000e+00> : vector<32x128xf32>
    %11 = tpu.matmul %10, %8, %cst_11 {dimension_numbers = #tpu.dot_dimension_numbers<[1], [0], [0], [1], [0, 0, 1, 1], [], []>} : vector<32x64xbf16>, vector<64x128xbf16>, vector<32x128xf32> -> vector<32x128xf32>
    %12 = arith.addf %6, %11 : vector<32x128xf32>
    %c0_12 = arith.constant 0 : index
    %c0_13 = arith.constant 0 : index
    %c5 = arith.constant 5 : index
    %13 = vector.load %arg3[%c0_12, %c0_13, %c5] : memref<1x64x256xbf16, #tpu.memory_space<vmem>>, vector<1x64x128xbf16>
    %14 = vector.shape_cast %13 : vector<1x64x128xbf16> to vector<64x128xbf16>
    %c2 = arith.constant 2 : index
    %c0_14 = arith.constant 0 : index
    %c0_15 = arith.constant 0 : index
    %15 = vector.load %arg1[%c2, %c0_14, %c0_15] : memref<4x32x64xbf16, #tpu.memory_space<vmem>>, vector<1x32x64xbf16>
    %16 = vector.shape_cast %15 : vector<1x32x64xbf16> to vector<32x64xbf16>
    %cst_16 = arith.constant dense<0.000000e+00> : vector<32x128xf32>
    %17 = tpu.matmul %16, %14, %cst_16 {dimension_numbers = #tpu.dot_dimension_numbers<[1], [0], [0], [1], [0, 0, 1, 1], [], []>} : vector<32x64xbf16>, vector<64x128xbf16>, vector<32x128xf32> -> vector<32x128xf32>
    %18 = arith.addf %12, %17 : vector<32x128xf32>
    %c0_17 = arith.constant 0 : index
    %c0_18 = arith.constant 0 : index
    %c6 = arith.constant 6 : index
    %19 = vector.load %arg3[%c0_17, %c0_18, %c6] : memref<1x64x256xbf16, #tpu.memory_space<vmem>>, vector<1x64x128xbf16>
    %20 = vector.shape_cast %19 : vector<1x64x128xbf16> to vector<64x128xbf16>
    %c3 = arith.constant 3 : index
    %c0_19 = arith.constant 0 : index
    %c0_20 = arith.constant 0 : index
    %21 = vector.load %arg1[%c3, %c0_19, %c0_20] : memref<4x32x64xbf16, #tpu.memory_space<vmem>>, vector<1x32x64xbf16>
    %22 = vector.shape_cast %21 : vector<1x32x64xbf16> to vector<32x64xbf16>
    %cst_21 = arith.constant dense<0.000000e+00> : vector<32x128xf32>
    %23 = tpu.matmul %22, %20, %cst_21 {dimension_numbers = #tpu.dot_dimension_numbers<[1], [0], [0], [1], [0, 0, 1, 1], [], []>} : vector<32x64xbf16>, vector<64x128xbf16>, vector<32x128xf32> -> vector<32x128xf32>
    %24 = arith.addf %18, %23 : vector<32x128xf32>
    %c0_22 = arith.constant 0 : index
    %c0_23 = arith.constant 0 : index
    %25 = vector.load %arg2[%c0_22, %c0_23] : memref<32x1xf32, #tpu.memory_space<vmem>>, vector<32x1xf32>
    %26 = vector.broadcast %25 : vector<32x1xf32> to vector<32x128xf32>
    %27 = arith.addf %24, %26 : vector<32x128xf32>
    %cst_24 = arith.constant 0.000000e+00 : f32
    %28 = vector.broadcast %cst_24 : f32 to vector<32x128xf32>
    %29 = arith.cmpf ogt, %27, %28 : vector<32x128xf32>
    %cst_25 = arith.constant 2.000000e-01 : f32
    %30 = vector.broadcast %cst_25 : f32 to vector<32x128xf32>
    %31 = arith.mulf %30, %27 : vector<32x128xf32>
    %32 = arith.select %29, %27, %31 : vector<32x128xi1>, vector<32x128xf32>
    %33 = arith.truncf %32 : vector<32x128xf32> to vector<32x128xbf16>
    %c0_26 = arith.constant 0 : index
    %c0_27 = arith.constant 0 : index
    %c0_28 = arith.constant 0 : index
    %34 = vector.load %arg4[%c0_26, %c0_27, %c0_28] : memref<1x32x128xbf16, #tpu.memory_space<vmem>>, vector<1x32x128xbf16>
    %35 = vector.shape_cast %34 : vector<1x32x128xbf16> to vector<32x128xbf16>
    %36 = vector.shape_cast %33 : vector<32x128xbf16> to vector<1x32x128xbf16>
    tpu.vector_store %arg4[%c0_26, %c0_27, %c0_28], %36 {strides = array<i32>} : memref<1x32x128xbf16, #tpu.memory_space<vmem>>, vector<1x32x128xbf16>,
    return
  }
  func.func @transform_0(%arg0: i32) -> (i32, i32, i32) {
    %c0_i32 = arith.constant 0 : i32
    %c0_i32_0 = arith.constant 0 : i32
    %c0_i32_1 = arith.constant 0 : i32
    %c0_i32_2 = arith.constant 0 : i32
    return %c0_i32, %c0_i32_0, %c0_i32_1 : i32, i32, i32
  }
  func.func @transform_1(%arg0: i32) -> (i32, i32) {
    %c0_i32 = arith.constant 0 : i32
    %c0_i32_0 = arith.constant 0 : i32
    %c0_i32_1 = arith.constant 0 : i32
    return %c0_i32, %c0_i32_0 : i32, i32
  }
  func.func @transform_2(%arg0: i32) -> (i32, i32, i32) {
    %c0_i32 = arith.constant 0 : i32
    %c0_i32_0 = arith.constant 0 : i32
    %c0_i32_1 = arith.constant 0 : i32
    return %arg0, %c0_i32, %c0_i32_0 : i32, i32, i32
  }
  func.func @transform_3(%arg0: i32) -> (i32, i32, i32) {
    %c0_i32 = arith.constant 0 : i32
    %c0_i32_0 = arith.constant 0 : i32
    %c0_i32_1 = arith.constant 0 : i32
    return %arg0, %c0_i32, %c0_i32_0 : i32, i32, i32
  }
}

module attributes {stable_mosaic.version = 11 : i64} {
  func.func @_conv_phase_kernel(%arg0: i32, %arg1: memref<4x32x128xbf16, #tpu.memory_space<vmem>>, %arg2: memref<32x1xf32, #tpu.memory_space<vmem>>, %arg3: memref<1x128x256xbf16, #tpu.memory_space<vmem>>, %arg4: memref<1x32x128xbf16, #tpu.memory_space<vmem>>) attributes {dimension_semantics = [#tpu.dimension_semantics<parallel>], iteration_bounds = array<i64: 4>, scalar_prefetch = 0 : i64, scratch_operands = 0 : i64, tpu.core_type = #tpu.core_type<tc>, window_params = [{pipeline_mode = #tpu.pipeline_mode<synchronous>, transform_indices = @transform_0, window_bounds = array<i64: 4, 32, 128>}, {pipeline_mode = #tpu.pipeline_mode<synchronous>, transform_indices = @transform_1, window_bounds = array<i64: 32, 1>}, {transform_indices = @transform_2, window_bounds = array<i64: 1, 128, 256>}, {transform_indices = @transform_3, window_bounds = array<i64: 1, 32, 128>}]} {
    %cst = arith.constant 0.000000e+00 : f32
    %0 = vector.broadcast %cst : f32 to vector<32x128xf32>
    %c0 = arith.constant 0 : index
    %c0_0 = arith.constant 0 : index
    %c0_1 = arith.constant 0 : index
    %1 = vector.load %arg3[%c0, %c0_0, %c0_1] : memref<1x128x256xbf16, #tpu.memory_space<vmem>>, vector<1x128x128xbf16>
    %2 = vector.shape_cast %1 : vector<1x128x128xbf16> to vector<128x128xbf16>
    %c0_2 = arith.constant 0 : index
    %c0_3 = arith.constant 0 : index
    %c0_4 = arith.constant 0 : index
    %3 = vector.load %arg1[%c0_2, %c0_3, %c0_4] : memref<4x32x128xbf16, #tpu.memory_space<vmem>>, vector<1x32x128xbf16>
    %4 = vector.shape_cast %3 : vector<1x32x128xbf16> to vector<32x128xbf16>
    %cst_5 = arith.constant dense<0.000000e+00> : vector<32x128xf32>
    %5 = tpu.matmul %4, %2, %cst_5 {dimension_numbers = #tpu.dot_dimension_numbers<[1], [0], [0], [1], [0, 0, 1, 1], [], []>} : vector<32x128xbf16>, vector<128x128xbf16>, vector<32x128xf32> -> vector<32x128xf32>
    %6 = arith.addf %0, %5 : vector<32x128xf32>
    %c0_6 = arith.constant 0 : index
    %c0_7 = arith.constant 0 : index
    %c1 = arith.constant 1 : index
    %7 = vector.load %arg3[%c0_6, %c0_7, %c1] : memref<1x128x256xbf16, #tpu.memory_space<vmem>>, vector<1x128x128xbf16>
    %8 = vector.shape_cast %7 : vector<1x128x128xbf16> to vector<128x128xbf16>
    %c1_8 = arith.constant 1 : index
    %c0_9 = arith.constant 0 : index
    %c0_10 = arith.constant 0 : index
    %9 = vector.load %arg1[%c1_8, %c0_9, %c0_10] : memref<4x32x128xbf16, #tpu.memory_space<vmem>>, vector<1x32x128xbf16>
    %10 = vector.shape_cast %9 : vector<1x32x128xbf16> to vector<32x128xbf16>
    %cst_11 = arith.constant dense<0.000000e+00> : vector<32x128xf32>
    %11 = tpu.matmul %10, %8, %cst_11 {dimension_numbers = #tpu.dot_dimension_numbers<[1], [0], [0], [1], [0, 0, 1, 1], [], []>} : vector<32x128xbf16>, vector<128x128xbf16>, vector<32x128xf32> -> vector<32x128xf32>
    %12 = arith.addf %6, %11 : vector<32x128xf32>
    %c0_12 = arith.constant 0 : index
    %c0_13 = arith.constant 0 : index
    %c3 = arith.constant 3 : index
    %13 = vector.load %arg3[%c0_12, %c0_13, %c3] : memref<1x128x256xbf16, #tpu.memory_space<vmem>>, vector<1x128x128xbf16>
    %14 = vector.shape_cast %13 : vector<1x128x128xbf16> to vector<128x128xbf16>
    %c2 = arith.constant 2 : index
    %c0_14 = arith.constant 0 : index
    %c0_15 = arith.constant 0 : index
    %15 = vector.load %arg1[%c2, %c0_14, %c0_15] : memref<4x32x128xbf16, #tpu.memory_space<vmem>>, vector<1x32x128xbf16>
    %16 = vector.shape_cast %15 : vector<1x32x128xbf16> to vector<32x128xbf16>
    %cst_16 = arith.constant dense<0.000000e+00> : vector<32x128xf32>
    %17 = tpu.matmul %16, %14, %cst_16 {dimension_numbers = #tpu.dot_dimension_numbers<[1], [0], [0], [1], [0, 0, 1, 1], [], []>} : vector<32x128xbf16>, vector<128x128xbf16>, vector<32x128xf32> -> vector<32x128xf32>
    %18 = arith.addf %12, %17 : vector<32x128xf32>
    %c0_17 = arith.constant 0 : index
    %c0_18 = arith.constant 0 : index
    %c4 = arith.constant 4 : index
    %19 = vector.load %arg3[%c0_17, %c0_18, %c4] : memref<1x128x256xbf16, #tpu.memory_space<vmem>>, vector<1x128x128xbf16>
    %20 = vector.shape_cast %19 : vector<1x128x128xbf16> to vector<128x128xbf16>
    %c3_19 = arith.constant 3 : index
    %c0_20 = arith.constant 0 : index
    %c0_21 = arith.constant 0 : index
    %21 = vector.load %arg1[%c3_19, %c0_20, %c0_21] : memref<4x32x128xbf16, #tpu.memory_space<vmem>>, vector<1x32x128xbf16>
    %22 = vector.shape_cast %21 : vector<1x32x128xbf16> to vector<32x128xbf16>
    %cst_22 = arith.constant dense<0.000000e+00> : vector<32x128xf32>
    %23 = tpu.matmul %22, %20, %cst_22 {dimension_numbers = #tpu.dot_dimension_numbers<[1], [0], [0], [1], [0, 0, 1, 1], [], []>} : vector<32x128xbf16>, vector<128x128xbf16>, vector<32x128xf32> -> vector<32x128xf32>
    %24 = arith.addf %18, %23 : vector<32x128xf32>
    %c0_23 = arith.constant 0 : index
    %c0_24 = arith.constant 0 : index
    %25 = vector.load %arg2[%c0_23, %c0_24] : memref<32x1xf32, #tpu.memory_space<vmem>>, vector<32x1xf32>
    %26 = vector.broadcast %25 : vector<32x1xf32> to vector<32x128xf32>
    %27 = arith.addf %24, %26 : vector<32x128xf32>
    %cst_25 = arith.constant 0.000000e+00 : f32
    %28 = vector.broadcast %cst_25 : f32 to vector<32x128xf32>
    %29 = arith.cmpf ogt, %27, %28 : vector<32x128xf32>
    %cst_26 = arith.constant 2.000000e-01 : f32
    %30 = vector.broadcast %cst_26 : f32 to vector<32x128xf32>
    %31 = arith.mulf %30, %27 : vector<32x128xf32>
    %32 = arith.select %29, %27, %31 : vector<32x128xi1>, vector<32x128xf32>
    %33 = arith.truncf %32 : vector<32x128xf32> to vector<32x128xbf16>
    %c0_27 = arith.constant 0 : index
    %c0_28 = arith.constant 0 : index
    %c0_29 = arith.constant 0 : index
    %34 = vector.load %arg4[%c0_27, %c0_28, %c0_29] : memref<1x32x128xbf16, #tpu.memory_space<vmem>>, vector<1x32x128xbf16>
    %35 = vector.shape_cast %34 : vector<1x32x128xbf16> to vector<32x128xbf16>
    %36 = vector.shape_cast %33 : vector<32x128xbf16> to vector<1x32x128xbf16>
    tpu.vector_store %arg4[%c0_27, %c0_28, %c0_29], %36 {strides = array<i32>} : memref<1x32x128xbf16, #tpu.memory_space<vmem>>, vector<1x32x128xbf16>,
    return
  }
  func.func @transform_0(%arg0: i32) -> (i32, i32, i32) {
    %c0_i32 = arith.constant 0 : i32
    %c0_i32_0 = arith.constant 0 : i32
    %c0_i32_1 = arith.constant 0 : i32
    %c0_i32_2 = arith.constant 0 : i32
    return %c0_i32, %c0_i32_0, %c0_i32_1 : i32, i32, i32
  }
  func.func @transform_1(%arg0: i32) -> (i32, i32) {
    %c0_i32 = arith.constant 0 : i32
    %c0_i32_0 = arith.constant 0 : i32
    %c0_i32_1 = arith.constant 0 : i32
    return %c0_i32, %c0_i32_0 : i32, i32
  }
  func.func @transform_2(%arg0: i32) -> (i32, i32, i32) {
    %c0_i32 = arith.constant 0 : i32
    %c0_i32_0 = arith.constant 0 : i32
    %c0_i32_1 = arith.constant 0 : i32
    return %arg0, %c0_i32, %c0_i32_0 : i32, i32, i32
  }
  func.func @transform_3(%arg0: i32) -> (i32, i32, i32) {
    %c0_i32 = arith.constant 0 : i32
    %c0_i32_0 = arith.constant 0 : i32
    %c0_i32_1 = arith.constant 0 : i32
    return %arg0, %c0_i32, %c0_i32_0 : i32, i32, i32
  }
}

module attributes {stable_mosaic.version = 11 : i64} {
  func.func @_fc_tail_kernel(%arg0: i32, %arg1: memref<4x128xbf16, #tpu.memory_space<vmem>>, %arg2: memref<128x16xbf16, #tpu.memory_space<vmem>>, %arg3: memref<1x16xf32, #tpu.memory_space<vmem>>, %arg4: memref<16x8xbf16, #tpu.memory_space<vmem>>, %arg5: memref<1x8xf32, #tpu.memory_space<vmem>>, %arg6: memref<8x1xbf16, #tpu.memory_space<vmem>>, %arg7: memref<1x1xf32, #tpu.memory_space<vmem>>, %arg8: memref<4x1xf32, #tpu.memory_space<vmem>>) attributes {dimension_semantics = [#tpu.dimension_semantics<parallel>], iteration_bounds = array<i64: 1>, scalar_prefetch = 0 : i64, scratch_operands = 0 : i64, tpu.core_type = #tpu.core_type<tc>, window_params = [{transform_indices = @transform_0, window_bounds = array<i64: 4, 128>}, {pipeline_mode = #tpu.pipeline_mode<synchronous>, transform_indices = @transform_1, window_bounds = array<i64: 128, 16>}, {pipeline_mode = #tpu.pipeline_mode<synchronous>, transform_indices = @transform_2, window_bounds = array<i64: 1, 16>}, {pipeline_mode = #tpu.pipeline_mode<synchronous>, transform_indices = @transform_3, window_bounds = array<i64: 16, 8>}, {pipeline_mode = #tpu.pipeline_mode<synchronous>, transform_indices = @transform_4, window_bounds = array<i64: 1, 8>}, {pipeline_mode = #tpu.pipeline_mode<synchronous>, transform_indices = @transform_5, window_bounds = array<i64: 8, 1>}, {pipeline_mode = #tpu.pipeline_mode<synchronous>, transform_indices = @transform_6, window_bounds = array<i64: 1, 1>}, {transform_indices = @transform_7, window_bounds = array<i64: 4, 1>}]} {
    %c0 = arith.constant 0 : index
    %c0_0 = arith.constant 0 : index
    %0 = vector.load %arg1[%c0, %c0_0] : memref<4x128xbf16, #tpu.memory_space<vmem>>, vector<4x128xbf16>
    %c0_1 = arith.constant 0 : index
    %c0_2 = arith.constant 0 : index
    %1 = vector.load %arg2[%c0_1, %c0_2] : memref<128x16xbf16, #tpu.memory_space<vmem>>, vector<128x16xbf16>
    %cst = arith.constant dense<0.000000e+00> : vector<4x16xf32>
    %2 = tpu.matmul %0, %1, %cst {dimension_numbers = #tpu.dot_dimension_numbers<[1], [0], [0], [1], [0, 0, 1, 1], [], []>} : vector<4x128xbf16>, vector<128x16xbf16>, vector<4x16xf32> -> vector<4x16xf32>
    %c0_3 = arith.constant 0 : index
    %c0_4 = arith.constant 0 : index
    %3 = vector.load %arg3[%c0_3, %c0_4] : memref<1x16xf32, #tpu.memory_space<vmem>>, vector<1x16xf32>
    %4 = vector.broadcast %3 : vector<1x16xf32> to vector<4x16xf32>
    %5 = arith.addf %2, %4 : vector<4x16xf32>
    %cst_5 = arith.constant 0.000000e+00 : f32
    %6 = vector.broadcast %cst_5 : f32 to vector<4x16xf32>
    %7 = arith.maximumf %5, %6 : vector<4x16xf32>
    %8 = arith.truncf %7 : vector<4x16xf32> to vector<4x16xbf16>
    %c0_6 = arith.constant 0 : index
    %c0_7 = arith.constant 0 : index
    %9 = vector.load %arg4[%c0_6, %c0_7] : memref<16x8xbf16, #tpu.memory_space<vmem>>, vector<16x8xbf16>
    %cst_8 = arith.constant dense<0.000000e+00> : vector<4x8xf32>
    %10 = tpu.matmul %8, %9, %cst_8 {dimension_numbers = #tpu.dot_dimension_numbers<[1], [0], [0], [1], [0, 0, 1, 1], [], []>} : vector<4x16xbf16>, vector<16x8xbf16>, vector<4x8xf32> -> vector<4x8xf32>
    %c0_9 = arith.constant 0 : index
    %c0_10 = arith.constant 0 : index
    %11 = vector.load %arg5[%c0_9, %c0_10] : memref<1x8xf32, #tpu.memory_space<vmem>>, vector<1x8xf32>
    %12 = vector.broadcast %11 : vector<1x8xf32> to vector<4x8xf32>
    %13 = arith.addf %10, %12 : vector<4x8xf32>
    %cst_11 = arith.constant 0.000000e+00 : f32
    %14 = vector.broadcast %cst_11 : f32 to vector<4x8xf32>
    %15 = arith.maximumf %13, %14 : vector<4x8xf32>
    %16 = arith.truncf %15 : vector<4x8xf32> to vector<4x8xbf16>
    %c0_12 = arith.constant 0 : index
    %c0_13 = arith.constant 0 : index
    %17 = vector.load %arg6[%c0_12, %c0_13] : memref<8x1xbf16, #tpu.memory_space<vmem>>, vector<8x1xbf16>
    %cst_14 = arith.constant dense<0.000000e+00> : vector<4x1xf32>
    %18 = tpu.matmul %16, %17, %cst_14 {dimension_numbers = #tpu.dot_dimension_numbers<[1], [0], [0], [1], [0, 0, 1, 1], [], []>} : vector<4x8xbf16>, vector<8x1xbf16>, vector<4x1xf32> -> vector<4x1xf32>
    %c0_15 = arith.constant 0 : index
    %c0_16 = arith.constant 0 : index
    %19 = vector.load %arg7[%c0_15, %c0_16] : memref<1x1xf32, #tpu.memory_space<vmem>>, vector<1x1xf32>
    %20 = vector.broadcast %19 : vector<1x1xf32> to vector<4x1xf32>
    %21 = arith.addf %18, %20 : vector<4x1xf32>
    %22 = arith.negf %21 : vector<4x1xf32>
    %23 = math.exp %22 : vector<4x1xf32>
    %cst_17 = arith.constant 1.000000e+00 : f32
    %24 = vector.broadcast %cst_17 : f32 to vector<4x1xf32>
    %25 = arith.addf %24, %23 : vector<4x1xf32>
    %26 = arith.divf %24, %25 : vector<4x1xf32>
    %c0_18 = arith.constant 0 : index
    %c0_19 = arith.constant 0 : index
    %27 = vector.load %arg8[%c0_18, %c0_19] : memref<4x1xf32, #tpu.memory_space<vmem>>, vector<4x1xf32>
    tpu.vector_store %arg8[%c0_18, %c0_19], %26 {strides = array<i32>} : memref<4x1xf32, #tpu.memory_space<vmem>>, vector<4x1xf32>,
    return
  }
  func.func @transform_0(%arg0: i32) -> (i32, i32) {
    %c0_i32 = arith.constant 0 : i32
    %c0_i32_0 = arith.constant 0 : i32
    return %arg0, %c0_i32 : i32, i32
  }
  func.func @transform_1(%arg0: i32) -> (i32, i32) {
    %c0_i32 = arith.constant 0 : i32
    %c0_i32_0 = arith.constant 0 : i32
    %c0_i32_1 = arith.constant 0 : i32
    return %c0_i32, %c0_i32_0 : i32, i32
  }
  func.func @transform_2(%arg0: i32) -> (i32, i32) {
    %c0_i32 = arith.constant 0 : i32
    %c0_i32_0 = arith.constant 0 : i32
    %c0_i32_1 = arith.constant 0 : i32
    return %c0_i32, %c0_i32_0 : i32, i32
  }
  func.func @transform_3(%arg0: i32) -> (i32, i32) {
    %c0_i32 = arith.constant 0 : i32
    %c0_i32_0 = arith.constant 0 : i32
    %c0_i32_1 = arith.constant 0 : i32
    return %c0_i32, %c0_i32_0 : i32, i32
  }
  func.func @transform_4(%arg0: i32) -> (i32, i32) {
    %c0_i32 = arith.constant 0 : i32
    %c0_i32_0 = arith.constant 0 : i32
    %c0_i32_1 = arith.constant 0 : i32
    return %c0_i32, %c0_i32_0 : i32, i32
  }
  func.func @transform_5(%arg0: i32) -> (i32, i32) {
    %c0_i32 = arith.constant 0 : i32
    %c0_i32_0 = arith.constant 0 : i32
    %c0_i32_1 = arith.constant 0 : i32
    return %c0_i32, %c0_i32_0 : i32, i32
  }
  func.func @transform_6(%arg0: i32) -> (i32, i32) {
    %c0_i32 = arith.constant 0 : i32
    %c0_i32_0 = arith.constant 0 : i32
    %c0_i32_1 = arith.constant 0 : i32
    return %c0_i32, %c0_i32_0 : i32, i32
  }
  func.func @transform_7(%arg0: i32) -> (i32, i32) {
    %c0_i32 = arith.constant 0 : i32
    %c0_i32_0 = arith.constant 0 : i32
    return %arg0, %c0_i32 : i32, i32
  }
}

</mosaic_0001>

<bundles_post_ra>
// kernel: discriminator_forward.5
= control target key start
LH: loop header
LB: loop body
LE: loop exit
PB: predicated region body
PF: predicated region fallthrough
CT: control target
= control target key end

     0   :  { %s834_s12 = smov 0   ;;  %s907_s0 = inlined_call_operand.vmem [shape: bf16[4,8,12], index: 0, kind: input, shape index: {}]   ;;  %s908_s1 = inlined_call_operand.vmem [shape: f32[8,1], index: 1, kind: input, shape index: {}]   ;;  %s909_s2 = inlined_call_operand.vmem [shape: bf16[4,12,512], index: 2, kind: input, shape index: {}]   ;;  %s910_s3 = inlined_call_operand.vmem [shape: bf16[4,8,384], index: 3, kind: output, shape index: {}]  }
   0x1 LB: > { %s710_s13 = sadd.s32 4294967295, %s806_s12   ;;  %p714_p0 = scmp.ge.s32.totalorder %s806_s12, 1  ;;  %s806_s12 = sphi %s834_s12, %s13_s12  }
   0x2   : > { %p137_p1 = scmp.lt.s32.totalorder %s806_s12, 5 }
   0x4   : > { %p138_p2 = pnand %p714_p0, %p137_p1 }
   0x5   : > { %p161_p3 = scmp.lt.s32.totalorder (!%p138_p2), %s710_s13, 3  ;;  %s811_s18 = smov (!%p138_p2), 127  }
   0x6   : > { %141 = sbr.rel (%p138_p2) target bundleno = 368 (0x170), region = 32  ;;  %s812_s19 = smov (!%p138_p2), 111  }
   0x7   : > { %s813_s20 = smov (!%p138_p2), 110  }
   0xb   : > { %v808_v0 = vmov 0.0   ;;  %s912_s13 = smov (!%p161_p3, %s710_s13), 3  ;;  %v809_v1 = vmov 0   ;;  %vm810_vm0 = vmmov 0   ;;  %v622_v6 = vld [vmem:[%s908_s1] sm:$0xff]  ;;  %vm205_vm1 = vcmask 1039360  }
   0xc   : > { %753 = vmatprep.subr.bf16.mxu1 %v808_v0  ;;  %255 = vmatprep.mubr.bf16.mxu0 %v809_v1  ;;  %s742_s14 = sshll.u32 %s912_s13, 5  ;;  %vm213_vm2 = vcmask 1045504   ;;  %v718_v17 = vld [vmem:[%s907_s0 + $0x4] sm:$0xf]  ;;  %vm209_vm3 = vcmask 97280   ;;  %vm412_vm4 = vcmask 908288  }
   0xd   : > { %755 = vmatprep.mubr.msk.bf16.mxu1 %vm810_vm0, %v808_v0  ;;  %792 = vset.pattern.permute.xlu0 %v809_v1  ;;  %s165_s17 = scalar_lea.vmem %s909_s2, %s742_s14  ;;  %v176_v27 = vld [vmem:[%s907_s0] sm:$0xf]  ;;  %vm522_vm5 = vcmask 900096   ;;  %v730_v37 = vld [vmem:[%s907_s0 + $0x8] sm:$0xf]  ;;  %s777_s4 = smul.u32 12, %s912_s13 }
   0xe   : > { %v793_v2 = vld [vmem:[%s165_s17 + $0x8] ss:$16 sps:$4 sm:$0x3f]   ;;  %v795_v3 = vld [vmem:[%s165_s17] ss:$16 sps:$4 sm:$0x3f]  }
   0xf   : > { %201 = vrot.lane.b32.xlu1 %v793_v2, %s811_s18  ;;  %v797_v4 = vld [vmem:[%s165_s17 + $0xc] ss:$16 sps:$4 sm:$0x3f]   ;;  %v798_v5 = vld [vmem:[%s165_s17 + $0x4] ss:$16 sps:$4 sm:$0x3f]   ;;  %197 = vrot.lane.b32.xlu0 %v795_v3, %s811_s18  ;;  %s170_s7 = scalar_lea.vmem %s910_s3, %s777_s4 }
  0x10   : > { %v799_v10 = vld [vmem:[%s165_s17 + $0x8] ss:$16 sps:$4 sm:$0x3f]   ;;  %v313_v21 = vsel %vm213_vm2, %v795_v3, 0  ;;  %v734_v40 = vld [vmem:[%s907_s0 + $0xc] sm:$0xf] }
  0x11   : > { %v319_v19 = vsel %vm213_vm2, %v799_v10, 0 }
  0x13   : > { %203 = vrot.lane.b32.xlu1 %v797_v4, %s811_s18  ;;  %199 = vrot.lane.b32.xlu0 %v798_v5, %s811_s18 }
  0x17   : > { %406 = vrot.lane.b32.xlu1 %v798_v5, %s812_s19  ;;  %404 = vrot.lane.b32.xlu0 %v795_v3, %s812_s19 }
  0x1b   : > { %410 = vrot.lane.b32.xlu1 %v797_v4, %s812_s19  ;;  %408 = vrot.lane.b32.xlu0 %v793_v2, %s812_s19 }
  0x1f   : > { %516 = vrot.lane.b32.xlu1 %v798_v5, %s813_s20  ;;  %514 = vrot.lane.b32.xlu0 %v795_v3, %s813_s20 }
  0x23   : > { %520 = vrot.lane.b32.xlu1 %v797_v4, %s813_s20  ;;  %518 = vrot.lane.b32.xlu0 %v793_v2, %s813_s20 }
  0x27   : > { %625 = vperm.xlu0 %792, %v622_v6  }
  0x81   : > { %v202_v7 = vpop.permute.xlu1 %201  ;;  %v198_v8 = vpop.permute.xlu0 %197 }
  0x85   : > { %v204_v9 = vpop.permute.xlu1 %203  ;;  %v200_v11 = vpop.permute.xlu0 %199 }
  0x86   : > { %v208_v12 = vsel %vm205_vm1, %v202_v7, %v204_v9  ;;  %v207_v13 = vsel %vm205_vm1, %v200_v11, %v202_v7  ;;  %v206_v14 = vsel %vm205_vm1, %v198_v8, %v200_v11 }
  0x87   : > { %v221_v15 = vsel %vm213_vm2, %v208_v12, 0  ;;  %723 = vmatprep.subr.msk.bf16.mxu0 %vm213_vm2, %v207_v13  ;;  %v215_v16 = vsel %vm213_vm2, %v206_v14, 0 }
  0x88   : > { %754 = vmatpush3.bf16.msra.mxu1 %v221_v15  ;;  %238 = vmatpush1.bf16.msra.mxu0 %v215_v16 }
  0x89   : > { %759 = vmatprep.subr.bf16.mxu1 %v808_v0  ;;  %v407_v18 = vpop.permute.xlu1 %406  ;;  %727 = vmatprep.subr.msk.bf16.mxu0 %vm213_vm2, %v798_v5  ;;  %v405_v20 = vpop.permute.xlu0 %404 }
  0x8a   : > { %v413_v24 = vsel %vm412_vm4, %v405_v20, %v407_v18 }
  0x8b   : > { %756 = vmatmul.mubr.msk.bf16.vlgmr.msra.gmra.mxu1 %vm209_vm3, %v718_v17  ;;  %724 = vmatmul.mubr.msk.bf16.vlgmr.msra.gmra.mxu0 %vm209_vm3, %v718_v17  ;;  %v420_v30 = vsel %vm213_vm2, %v413_v24, 0 }
  0x8c   : > { %760 = vmatpush3.bf16.msra.mxu1 %v319_v19  ;;  %336 = vmatpush1.bf16.msra.mxu0 %v313_v21 }
  0x8d   : > { %v411_v22 = vpop.permute.xlu1 %410  ;;  %353 = vmatprep.mubr.bf16.mxu0 %v809_v1  ;;  %v409_v23 = vpop.permute.xlu0 %408  ;;  %761 = vmatprep.mubr.msk.bf16.mxu1 %vm810_vm0, %v808_v0 }
  0x8e   : > { %765 = vmatprep.subr.bf16.mxu1 %v808_v0  ;;  %v414_v25 = vsel %vm412_vm4, %v407_v18, %v409_v23  ;;  %v415_v26 = vsel %vm412_vm4, %v409_v23, %v411_v22 }
  0x8f   : > { %731 = vmatprep.subr.msk.bf16.mxu0 %vm213_vm2, %v414_v25  ;;  %v426_v28 = vsel %vm213_vm2, %v415_v26, 0 }
  0x91   : > { %v517_v29 = vpop.permute.xlu1 %516  ;;  %v515_v31 = vpop.permute.xlu0 %514 }
  0x92   : > { %v523_v34 = vsel %vm522_vm5, %v515_v31, %v517_v29 }
  0x93   : > { %762 = vmatmul.mubr.msk.bf16.vlgmr.msra.gmra.mxu1 %vm209_vm3, %v176_v27  ;;  %728 = vmatmul.mubr.msk.bf16.vlgmr.msra.gmra.mxu0 %vm209_vm3, %v176_v27  ;;  %v530_v39 = vsel %vm213_vm2, %v523_v34, 0 }
  0x94   : > { %766 = vmatpush3.bf16.msra.mxu1 %v426_v28  ;;  %443 = vmatpush1.bf16.msra.mxu0 %v420_v30 }
  0x95   : > { %v521_v32 = vpop.permute.xlu1 %520  ;;  %460 = vmatprep.mubr.bf16.mxu0 %v809_v1  ;;  %v519_v33 = vpop.permute.xlu0 %518  ;;  %767 = vmatprep.mubr.msk.bf16.mxu1 %vm810_vm0, %v808_v0 }
  0x96   : > { %771 = vmatprep.subr.bf16.mxu1 %v808_v0  ;;  %v524_v35 = vsel %vm522_vm5, %v517_v29, %v519_v33  ;;  %v525_v36 = vsel %vm522_vm5, %v519_v33, %v521_v32 }
  0x97   : > { %735 = vmatprep.subr.msk.bf16.mxu0 %vm213_vm2, %v524_v35  ;;  %v536_v38 = vsel %vm213_vm2, %v525_v36, 0 }
  0x9b   : > { %768 = vmatmul.mubr.msk.bf16.vlgmr.msra.gmra.mxu1 %vm209_vm3, %v730_v37  ;;  %732 = vmatmul.mubr.msk.bf16.vlgmr.msra.gmra.mxu0 %vm209_vm3, %v730_v37 }
  0x9c   : > { %772 = vmatpush3.bf16.msra.mxu1 %v536_v38  ;;  %553 = vmatpush1.bf16.msra.mxu0 %v530_v39 }
  0x9d   : > { %570 = vmatprep.mubr.bf16.mxu0 %v809_v1  ;;  %773 = vmatprep.mubr.msk.bf16.mxu1 %vm810_vm0, %v808_v0 }
  0xa2   : > { %v626_v7 = vpop.permute.xlu0 %625 }
  0xa3   : > { %774 = vmatmul.mubr.msk.bf16.vlgmr.msra.gmra.mxu1 %vm209_vm3, %v734_v40  ;;  %736 = vmatmul.mubr.msk.bf16.vlgmr.msra.gmra.mxu0 %vm209_vm3, %v734_v40 }
 0x14b   : > { %v298_v41 = vpop.f32.mrf.mxu1  ;;  %v257_v42 = vpop.f32.mrf.mxu0 }
 0x14d   : > { %v757_v43 = vpop.f32.mrf.mxu1  ;;  %v259_v44 = vpop.f32.mrf.mxu0 }
 0x14f   : > { %v301_v45 = vpop.f32.mrf.mxu1  ;;  %v261_v46 = vpop.f32.mrf.mxu0 }
 0x151   : > { %v758_v47 = vpop.f32.mrf.mxu1  ;;  %v262_v48 = vpop.f32.mrf.mxu0 }
 0x153   : > { %v396_v49 = vpop.f32.mrf.mxu1  ;;  %v355_v50 = vpop.f32.mrf.mxu0 }
 0x154   : > { %v397_v62 = vadd.f32 %v396_v49, %v298_v41  ;;  %v356_v0 = vadd.f32 %v355_v50, %v257_v42 }
 0x155   : > { %v763_v51 = vpop.f32.mrf.mxu1  ;;  %v357_v52 = vpop.f32.mrf.mxu0 }
 0x156   : > { %v358_v4 = vadd.f32 %v357_v52, %v259_v44 }
 0x157   : > { %v399_v53 = vpop.f32.mrf.mxu1  ;;  %v359_v54 = vpop.f32.mrf.mxu0 }
 0x159   : > { %v764_v55 = vpop.f32.mrf.mxu1  ;;  %v360_v56 = vpop.f32.mrf.mxu0 }
 0x15b   : > { %v503_v57 = vpop.f32.mrf.mxu1  ;;  %v462_v58 = vpop.f32.mrf.mxu0 }
 0x15c   : > { %v511_v2 = vadd.f32 %v503_v57, %v397_v62  ;;  %v509_v5 = vadd.f32 %v462_v58, %v356_v0 }
 0x15d   : > { %v769_v59 = vpop.f32.mrf.mxu1  ;;  %v464_v60 = vpop.f32.mrf.mxu0 }
 0x15e   : > { %v510_v10 = vadd.f32 %v464_v60, %v358_v4 }
 0x15f   : > { %v506_v61 = vpop.f32.mrf.mxu1  ;;  %v466_v63 = vpop.f32.mrf.mxu0 }
 0x161   : > { %v770_v1 = vpop.f32.mrf.mxu1  ;;  %v467_v3 = vpop.f32.mrf.mxu0 }
 0x163   : > { %v613_v6 = vpop.f32.mrf.mxu1  ;;  %v572_v8 = vpop.f32.mrf.mxu0 }
 0x164   : > { %v621_v9 = vadd.f32 %v613_v6, %v511_v2  ;;  %v619_v11 = vadd.f32 %v572_v8, %v509_v5 }
 0x165   : > { %v775_v12 = vpop.f32.mrf.mxu1  ;;  %v574_v14 = vpop.f32.mrf.mxu0 }
 0x166   : > { %v630_v13 = vadd.f32 %v626_v7, %v621_v9  ;;  %v628_v15 = vadd.f32 %v626_v7, %v619_v11  ;;  %v620_v16 = vadd.f32 %v574_v14, %v510_v10 }
 0x167   : > { %v616_v17 = vpop.f32.mrf.mxu1  ;;  %v576_v19 = vpop.f32.mrf.mxu0 }
 0x168   : > { %vm633_vm6 = vcmp.gt.f32.partialorder %v630_v13, 0.0  ;;  %v636_v18 = vmul.f32 0.2, %v630_v13  ;;  %v634_v20 = vmul.f32 0.2, %v628_v15  ;;  %v629_v21 = vadd.f32 %v626_v7, %v620_v16 }
 0x169   : > { %v776_v22 = vpop.f32.mrf.mxu1  ;;  %vm631_vm7 = vcmp.gt.f32.partialorder %v628_v15, 0.0  ;;  %v577_v24 = vpop.f32.mrf.mxu0 }
 0x16a   : > { %v639_v23 = vsel %vm633_vm6, %v630_v13, %v636_v18  ;;  %vm632_vm8 = vcmp.gt.f32.partialorder %v629_v21, 0.0  ;;  %v635_v26 = vmul.f32 0.2, %v629_v21  ;;  %v637_v27 = vsel %vm631_vm7, %v628_v15, %v634_v20 }
 0x16b   : > { %v744_v25 = vpack.c.bf16 %v639_v23, %v639_v23 }
 0x16c   : > { %v638_v28 = vsel %vm632_vm8, %v629_v21, %v635_v26 }
 0x16d   : > { %654 = vst [vmem:[%s170_s7 + $0x8] sm:$0xf] %v744_v25  ;;  %v743_v29 = vpack.c.bf16 %v638_v28, %v637_v27 }
 0x16f   : > { %653 = vst [vmem:[%s170_s7] sm:$0xff] %v743_v29 }
 0x170 PF: > { %s13_s12 = sadd.s32 1, %s806_s12  }
 0x171   : > { %p10_p4 = scmp.ge.s32.totalorder %s13_s12, 6  }
 0x173   :  { %12 = sbr.rel (!%p10_p4) target bundleno = 1 (0x1), region = 65 }

// kernel: discriminator_forward.6
= control target key start
LH: loop header
LB: loop body
LE: loop exit
PB: predicated region body
PF: predicated region fallthrough
CT: control target
= control target key end

     0   :  { %s692_s12 = smov 0   ;;  %s755_s0 = inlined_call_operand.vmem [shape: bf16[4,16,32], index: 0, kind: input, shape index: {}]   ;;  %s756_s1 = inlined_call_operand.vmem [shape: f32[16,1], index: 1, kind: input, shape index: {}]   ;;  %s757_s2 = inlined_call_operand.vmem [shape: bf16[4,32,256], index: 2, kind: input, shape index: {}]   ;;  %s758_s3 = inlined_call_operand.vmem [shape: bf16[4,16,128], index: 3, kind: output, shape index: {}]  }
   0x1 LB: > { %s544_s13 = sadd.s32 4294967295, %s664_s12   ;;  %p548_p0 = scmp.ge.s32.totalorder %s664_s12, 1  ;;  %s664_s12 = sphi %s692_s12, %s13_s12  }
   0x2   : > { %p137_p1 = scmp.lt.s32.totalorder %s664_s12, 5 }
   0x4   : > { %p138_p2 = pnand %p548_p0, %p137_p1 }
   0x5   : > { %p161_p3 = scmp.lt.s32.totalorder (!%p138_p2), %s544_s13, 3  ;;  %s668_s18 = smov (!%p138_p2), 127  }
   0x6   : > { %141 = sbr.rel (%p138_p2) target bundleno = 361 (0x169), region = 32  ;;  %s669_s21 = smov (!%p138_p2), 119  }
   0x7   : > { %s670_s22 = smov (!%p138_p2), 118  }
   0xb   : > { %v666_v0 = vmov 0.0   ;;  %s760_s13 = smov (!%p161_p3, %s544_s13), 3  ;;  %vm667_vm0 = vmmov 0   ;;  %v654_v7 = vld [vmem:[%s755_s0] sm:$0xff]   ;;  %vm219_vm1 = vcmask 261120   ;;  %v671_v8 = vmov 0  }
   0xc   : > { %606 = vmatprep.subr.bf16.mxu1 %v666_v0  ;;  %598 = vmatprep.subr.bf16.mxu0 %v666_v0  ;;  %s577_s14 = sshll.u32 %s760_s13, 5  ;;  %v459_v9 = vld [vmem:[%s756_s1] sm:$0xff]  ;;  %v460_v10 = vld [vmem:[%s756_s1 + $0x8] sm:$0xff]  ;;  %vm214_vm2 = vcmask 1039360   ;;  %vm341_vm3 = vcmask 973824   ;;  %vm408_vm4 = vcmask 965632  }
   0xd   : > { %s165_s17 = scalar_lea.vmem %s757_s2, %s577_s14  ;;  %610 = vmatprep.mubr.msk.bf16.mxu1 %vm667_vm0, %v666_v0  ;;  %602 = vmatprep.mubr.msk.bf16.mxu0 %vm667_vm0, %v666_v0  ;;  %v655_v19 = vld [vmem:[%s755_s0 + $0x8] sm:$0xff]   ;;  %v656_v27 = vld [vmem:[%s755_s0 + $0x10] sm:$0xff]   ;;  %v657_v31 = vld [vmem:[%s755_s0 + $0x18] sm:$0xff]   ;;  %s578_s6 = sshll.u32 %s760_s13, 3 }
   0xe   : > { %v646_v1 = vld [vmem:[%s165_s17 + $0x10] ss:$8 sps:$4 sm:$0xff]   ;;  %v648_v2 = vld [vmem:[%s165_s17] ss:$8 sps:$4 sm:$0xff]   ;;  %v650_v3 = vld [vmem:[%s165_s17 + $0x14] ss:$8 sps:$4 sm:$0xff]   ;;  %644 = vset.pattern.permute.xlu0 %v671_v8  ;;  %645 = vset.pattern.permute.xlu1 %v671_v8  ;;  %s170_s9 = scalar_lea.vmem %s758_s3, %s578_s6 }
   0xf   : > { %210 = vrot.lane.b32.xlu0 %v646_v1, %s668_s18  ;;  %v651_v4 = vld [vmem:[%s165_s17 + $0x4] ss:$8 sps:$4 sm:$0xff]   ;;  %206 = vrot.lane.b32.xlu1 %v648_v2, %s668_s18  ;;  %v652_v5 = vld [vmem:[%s165_s17 + $0x10] ss:$8 sps:$4 sm:$0xff]  }
  0x10   : > { %607 = vmatpush3.bf16.msra.mxu1 %v652_v5  ;;  %v653_v6 = vld [vmem:[%s165_s17] ss:$8 sps:$4 sm:$0xff]  }
  0x11   : > { %608 = vmatprep.subr.bf16.mxu1 %v666_v0 }
  0x13   : > { %212 = vrot.lane.b32.xlu0 %v650_v3, %s668_s18  ;;  %208 = vrot.lane.b32.xlu1 %v651_v4, %s668_s18 }
  0x14   : > { %609 = vmatpush3.bf16.msra.mxu1 %v653_v6 }
  0x15   : > { %622 = vmatprep.subr.bf16.mxu1 %v666_v0 }
  0x17   : > { %337 = vrot.lane.b32.xlu0 %v646_v1, %s669_s21  ;;  %339 = vrot.lane.b32.xlu1 %v650_v3, %s669_s21 }
  0x18   : > { %611 = vmatmul.mubr.msk.bf16.vlgmr.msra.gmra.mxu1 %vm219_vm1, %v654_v7 }
  0x19   : > { %626 = vmatprep.mubr.msk.bf16.mxu1 %vm667_vm0, %v666_v0 }
  0x1b   : > { %404 = vrot.lane.b32.xlu0 %v646_v1, %s670_s22  ;;  %406 = vrot.lane.b32.xlu1 %v650_v3, %s670_s22 }
  0x1f   : > { %333 = vrot.lane.b32.xlu0 %v648_v2, %s669_s21  ;;  %335 = vrot.lane.b32.xlu1 %v651_v4, %s669_s21 }
  0x23   : > { %400 = vrot.lane.b32.xlu0 %v648_v2, %s670_s22  ;;  %402 = vrot.lane.b32.xlu1 %v651_v4, %s670_s22 }
  0x27   : > { %463 = vperm.xlu0 %644, %v459_v9   ;;  %468 = vperm.xlu1 %645, %v460_v10  }
  0x81   : > { %v211_v11 = vpop.permute.xlu0 %210  ;;  %v207_v12 = vpop.permute.xlu1 %206 }
  0x85   : > { %v213_v13 = vpop.permute.xlu0 %212  ;;  %v209_v14 = vpop.permute.xlu1 %208 }
  0x86   : > { %v216_v15 = vsel %vm214_vm2, %v211_v11, %v213_v13  ;;  %v215_v18 = vsel %vm214_vm2, %v207_v12, %v209_v14 }
  0x87   : > { %599 = vmatpush3.bf16.msra.mxu0 %v216_v15 }
  0x88   : > { %600 = vmatprep.subr.bf16.mxu0 %v666_v0 }
  0x89   : > { %v338_v16 = vpop.permute.xlu0 %337  ;;  %v340_v17 = vpop.permute.xlu1 %339 }
  0x8a   : > { %v343_v21 = vsel %vm341_vm3, %v338_v16, %v340_v17 }
  0x8b   : > { %601 = vmatpush3.bf16.msra.mxu0 %v215_v18 }
  0x8c   : > { %614 = vmatprep.subr.bf16.mxu0 %v666_v0 }
  0x8d   : > { %v405_v20 = vpop.permute.xlu0 %404  ;;  %v407_v22 = vpop.permute.xlu1 %406 }
  0x8e   : > { %603 = vmatmul.mubr.msk.bf16.vlgmr.msra.gmra.mxu0 %vm219_vm1, %v655_v19  ;;  %v410_v23 = vsel %vm408_vm4, %v405_v20, %v407_v22 }
  0x8f   : > { %615 = vmatpush3.bf16.msra.mxu0 %v343_v21  ;;  %618 = vmatprep.mubr.msk.bf16.mxu0 %vm667_vm0, %v666_v0 }
  0x90   : > { %623 = vmatpush3.bf16.msra.mxu1 %v410_v23  ;;  %616 = vmatprep.subr.bf16.mxu0 %v666_v0 }
  0x91   : > { %v334_v24 = vpop.permute.xlu0 %333  ;;  %624 = vmatprep.subr.bf16.mxu1 %v666_v0  ;;  %v336_v25 = vpop.permute.xlu1 %335 }
  0x92   : > { %v342_v26 = vsel %vm341_vm3, %v334_v24, %v336_v25 }
  0x93   : > { %617 = vmatpush3.bf16.msra.mxu0 %v342_v26 }
  0x95   : > { %v401_v28 = vpop.permute.xlu0 %400  ;;  %v403_v29 = vpop.permute.xlu1 %402 }
  0x96   : > { %v409_v30 = vsel %vm408_vm4, %v401_v28, %v403_v29  ;;  %619 = vmatmul.mubr.msk.bf16.vlgmr.msra.gmra.mxu0 %vm219_vm1, %v656_v27 }
  0x97   : > { %625 = vmatpush3.bf16.msra.mxu1 %v409_v30 }
  0x9a   : > { %627 = vmatmul.mubr.msk.bf16.vlgmr.msra.gmra.mxu1 %vm219_vm1, %v657_v31 }
  0xa2   : > { %v464_v44 = vpop.permute.xlu0 %463  ;;  %v469_v54 = vpop.permute.xlu1 %468 }
  0xd8   : > { %v318_v32 = vpop.f32.mrf.mxu1 }
  0xda   : > { %v612_v33 = vpop.f32.mrf.mxu1 }
  0xdc   : > { %v321_v34 = vpop.f32.mrf.mxu1 }
  0xde   : > { %v613_v35 = vpop.f32.mrf.mxu1 }
 0x14e   : > { %v257_v36 = vpop.f32.mrf.mxu0 }
 0x14f   : > { %v319_v41 = vadd.f32 %v318_v32, %v257_v36 }
 0x150   : > { %v604_v37 = vpop.f32.mrf.mxu0 }
 0x152   : > { %v260_v38 = vpop.f32.mrf.mxu0 }
 0x153   : > { %v322_v47 = vadd.f32 %v321_v34, %v260_v38 }
 0x154   : > { %v605_v39 = vpop.f32.mrf.mxu0 }
 0x156   : > { %v383_v40 = vpop.f32.mrf.mxu0 }
 0x157   : > { %v390_v43 = vadd.f32 %v383_v40, %v319_v41 }
 0x158   : > { %v620_v42 = vpop.f32.mrf.mxu0 }
 0x15a   : > { %v386_v45 = vpop.f32.mrf.mxu0  ;;  %v450_v46 = vpop.f32.mrf.mxu1 }
 0x15b   : > { %v457_v48 = vadd.f32 %v450_v46, %v390_v43  ;;  %v391_v51 = vadd.f32 %v386_v45, %v322_v47 }
 0x15c   : > { %v621_v49 = vpop.f32.mrf.mxu0  ;;  %v628_v50 = vpop.f32.mrf.mxu1 }
 0x15d   : > { %v471_v52 = vadd.f32 %v464_v44, %v457_v48 }
 0x15e   : > { %v453_v53 = vpop.f32.mrf.mxu1 }
 0x15f   : > { %v458_v55 = vadd.f32 %v453_v53, %v391_v51  ;;  %v475_v57 = vmul.f32 0.2, %v471_v52  ;;  %vm473_vm5 = vcmp.gt.f32.partialorder %v471_v52, 0.0 }
 0x160   : > { %v629_v56 = vpop.f32.mrf.mxu1 }
 0x161   : > { %v472_v58 = vadd.f32 %v469_v54, %v458_v55  ;;  %v477_v60 = vsel %vm473_vm5, %v471_v52, %v475_v57 }
 0x163   : > { %vm474_vm6 = vcmp.gt.f32.partialorder %v472_v58, 0.0  ;;  %v476_v59 = vmul.f32 0.2, %v472_v58 }
 0x165   : > { %v478_v61 = vsel %vm474_vm6, %v472_v58, %v476_v59 }
 0x166   : > { %v584_v62 = vpack.c.bf16 %v478_v61, %v477_v60 }
 0x168   : > { %585 = vst [vmem:[%s170_s9] sm:$0xff] %v584_v62  }
 0x169 PF: > { %s13_s12 = sadd.s32 1, %s664_s12  }
 0x16a   : > { %p10_p4 = scmp.ge.s32.totalorder %s13_s12, 6  }
 0x16c   :  { %12 = sbr.rel (!%p10_p4) target bundleno = 1 (0x1), region = 65 }

// kernel: discriminator_forward.7
= control target key start
LH: loop header
LB: loop body
LE: loop exit
PB: predicated region body
PF: predicated region fallthrough
CT: control target
= control target key end

     0   :  { %s936_s12 = smov 0   ;;  %s1013_s0 = inlined_call_operand.vmem [shape: bf16[4,32,64], index: 0, kind: input, shape index: {}]   ;;  %s1014_s1 = inlined_call_operand.vmem [shape: f32[32,1], index: 1, kind: input, shape index: {}]   ;;  %s1015_s2 = inlined_call_operand.vmem [shape: bf16[4,64,256], index: 2, kind: input, shape index: {}]   ;;  %s1016_s3 = inlined_call_operand.vmem [shape: bf16[4,32,128], index: 3, kind: output, shape index: {}]  }
   0x1 LB: > { %s722_s13 = sadd.s32 4294967295, %s910_s12   ;;  %p726_p0 = scmp.ge.s32.totalorder %s910_s12, 1  ;;  %s910_s12 = sphi %s936_s12, %s13_s12  }
   0x2   : > { %p137_p1 = scmp.lt.s32.totalorder %s910_s12, 5 }
   0x4   : > { %p138_p2 = pnand %p726_p0, %p137_p1 }
   0x5   : > { %p161_p3 = scmp.lt.s32.totalorder (!%p138_p2), %s722_s13, 3  ;;  %s912_s18 = smov (!%p138_p2), 127  }
   0x6   : > { %141 = sbr.rel (%p138_p2) target bundleno = 388 (0x184), region = 32  ;;  %s913_s23 = smov (!%p138_p2), 123  }
   0x7   : > { %s914_s26 = smov (!%p138_p2), 122  }
   0xb   : > { %s1018_s13 = smov (!%p161_p3, %s722_s13), 3  ;;  %v896_v8 = vld [vmem:[%s1013_s0 + $0x10] sm:$0xff]   ;;  %vm264_vm0 = vcmask 523264   ;;  %v897_v9 = vld [vmem:[%s1013_s0] sm:$0xff]   ;;  %v899_v14 = vld [vmem:[%s1013_s0 + $0x8] sm:$0xff]   ;;  %v915_v16 = vmov 0  }
   0xc   : > { %s777_s14 = sshll.u32 %s1018_s13, 6  ;;  %826 = vmatprep.mubr.msk.bf16.mxu0 %vm264_vm0, %v896_v8  ;;  %838 = vmatprep.mubr.msk.bf16.mxu1 %vm264_vm0, %v897_v9  ;;  %v902_v15 = vld [vmem:[%s1013_s0 + $0x30] sm:$0xff]   ;;  %v607_v17 = vld [vmem:[%s1014_s1] sm:$0xff]  ;;  %v608_v18 = vld [vmem:[%s1014_s1 + $0x8] sm:$0xff]  ;;  %vm255_vm1 = vcmask 1039360   ;;  %vm440_vm2 = vcmask 1006592  }
   0xd   : > { %s165_s17 = scalar_lea.vmem %s1015_s2, %s777_s14  ;;  %879 = vset.pattern.permute.xlu1 %v915_v16  ;;  %878 = vset.pattern.permute.xlu0 %v915_v16  ;;  %v610_v19 = vld [vmem:[%s1014_s1 + $0x18] sm:$0xff]  ;;  %v609_v20 = vld [vmem:[%s1014_s1 + $0x10] sm:$0xff]  ;;  %vm539_vm3 = vcmask 998400   ;;  %v900_v38 = vld [vmem:[%s1013_s0 + $0x20] sm:$0xff]   ;;  %s778_s20 = sshll.u32 %s1018_s13, 4 }
   0xe   : > { %v880_v0 = vld [vmem:[%s165_s17 + $0x30] ss:$8 sps:$4 sm:$0xff]   ;;  %v882_v1 = vld [vmem:[%s165_s17 + $0x20] ss:$8 sps:$4 sm:$0xff]   ;;  %v884_v2 = vld [vmem:[%s165_s17 + $0x34] ss:$8 sps:$4 sm:$0xff]  }
   0xf   : > { %251 = vrot.lane.b32.xlu0 %v880_v0, %s912_s18  ;;  %247 = vrot.lane.b32.xlu1 %v882_v1, %s912_s18  ;;  %v885_v3 = vld [vmem:[%s165_s17 + $0x24] ss:$8 sps:$4 sm:$0xff]   ;;  %v886_v4 = vld [vmem:[%s165_s17 + $0x14] ss:$8 sps:$4 sm:$0xff]  }
  0x10   : > { %v888_v5 = vld [vmem:[%s165_s17 + $0x10] ss:$8 sps:$4 sm:$0xff]   ;;  %v893_v7 = vld [vmem:[%s165_s17 + $0x20] ss:$8 sps:$4 sm:$0xff]   ;;  %v889_v12 = vld [vmem:[%s165_s17 + $0x4] ss:$8 sps:$4 sm:$0xff]  }
  0x11   : > { %v892_v6 = vld [vmem:[%s165_s17 + $0x30] ss:$8 sps:$4 sm:$0xff]   ;;  %v891_v10 = vld [vmem:[%s165_s17] ss:$8 sps:$4 sm:$0xff]  }
  0x12   : > { %830 = vmatprep.subr.bf16.mxu1 %v892_v6  ;;  %v894_v11 = vld [vmem:[%s165_s17 + $0x10] ss:$8 sps:$4 sm:$0xff]   ;;  %v895_v13 = vld [vmem:[%s165_s17] ss:$8 sps:$4 sm:$0xff]  }
  0x13   : > { %253 = vrot.lane.b32.xlu0 %v884_v2, %s912_s18  ;;  %249 = vrot.lane.b32.xlu1 %v885_v3, %s912_s18  ;;  %v898_v35 = vld [vmem:[%s1013_s0 + $0x18] sm:$0xff]   ;;  %v901_v56 = vld [vmem:[%s1013_s0 + $0x28] sm:$0xff]  }
  0x14   : > { %831 = vmatpush3.bf16.msra.mxu1 %v892_v6  ;;  %v903_v60 = vld [vmem:[%s1013_s0 + $0x38] sm:$0xff]  }
  0x15   : > { %832 = vmatprep.subr.bf16.mxu1 %v893_v7 }
  0x17   : > { %243 = vrot.lane.b32.xlu0 %v888_v5, %s912_s18  ;;  %245 = vrot.lane.b32.xlu1 %v886_v4, %s912_s18 }
  0x18   : > { %833 = vmatpush3.bf16.msra.mxu1 %v893_v7 }
  0x19   : > { %834 = vmatprep.subr.bf16.mxu1 %v894_v11 }
  0x1b   : > { %239 = vrot.lane.b32.xlu0 %v891_v10, %s912_s18  ;;  %241 = vrot.lane.b32.xlu1 %v889_v12, %s912_s18 }
  0x1c   : > { %835 = vmatpush3.bf16.msra.mxu1 %v894_v11 }
  0x1d   : > { %836 = vmatprep.subr.bf16.mxu1 %v895_v13 }
  0x1f   : > { %436 = vrot.lane.b32.xlu0 %v880_v0, %s913_s23  ;;  %438 = vrot.lane.b32.xlu1 %v884_v2, %s913_s23 }
  0x20   : > { %837 = vmatpush3.bf16.msra.mxu1 %v895_v13 }
  0x23   : > { %535 = vrot.lane.b32.xlu0 %v880_v0, %s914_s26  ;;  %537 = vrot.lane.b32.xlu1 %v884_v2, %s914_s26 }
  0x24   : > { %839 = vmatmul.mubr.msk.bf16.vlgmr.msra.gmra.mxu1 %vm264_vm0, %v899_v14 }
  0x25   : > { %862 = vmatprep.mubr.msk.bf16.mxu1 %vm264_vm0, %v902_v15 }
  0x27   : > { %432 = vrot.lane.b32.xlu0 %v882_v1, %s913_s23  ;;  %434 = vrot.lane.b32.xlu1 %v885_v3, %s913_s23 }
  0x2b   : > { %531 = vrot.lane.b32.xlu0 %v882_v1, %s914_s26  ;;  %533 = vrot.lane.b32.xlu1 %v885_v3, %s914_s26 }
  0x2f   : > { %428 = vrot.lane.b32.xlu0 %v888_v5, %s913_s23  ;;  %430 = vrot.lane.b32.xlu1 %v886_v4, %s913_s23 }
  0x33   : > { %527 = vrot.lane.b32.xlu0 %v888_v5, %s914_s26  ;;  %529 = vrot.lane.b32.xlu1 %v886_v4, %s914_s26 }
  0x37   : > { %424 = vrot.lane.b32.xlu0 %v891_v10, %s913_s23  ;;  %426 = vrot.lane.b32.xlu1 %v889_v12, %s913_s23  ;;  %s170_s23 = scalar_lea.vmem %s1016_s3, %s778_s20 }
  0x3b   : > { %523 = vrot.lane.b32.xlu0 %v891_v10, %s914_s26  ;;  %525 = vrot.lane.b32.xlu1 %v889_v12, %s914_s26 }
  0x3f   : > { %613 = vperm.xlu0 %878, %v607_v17   ;;  %618 = vperm.xlu1 %879, %v608_v18  }
  0x43   : > { %628 = vperm.xlu0 %878, %v610_v19   ;;  %623 = vperm.xlu1 %879, %v609_v20  }
  0x81   : > { %v252_v21 = vpop.permute.xlu0 %251  ;;  %v248_v22 = vpop.permute.xlu1 %247 }
  0x85   : > { %v254_v23 = vpop.permute.xlu0 %253  ;;  %v250_v24 = vpop.permute.xlu1 %249 }
  0x86   : > { %v259_v25 = vsel %vm255_vm1, %v252_v21, %v254_v23  ;;  %v258_v26 = vsel %vm255_vm1, %v248_v22, %v250_v24 }
  0x87   : > { %818 = vmatprep.subr.bf16.mxu0 %v259_v25 }
  0x88   : > { %819 = vmatpush3.bf16.msra.mxu0 %v259_v25 }
  0x89   : > { %820 = vmatprep.subr.bf16.mxu0 %v258_v26  ;;  %v244_v27 = vpop.permute.xlu0 %243  ;;  %v246_v28 = vpop.permute.xlu1 %245 }
  0x8a   : > { %v257_v29 = vsel %vm255_vm1, %v244_v27, %v246_v28 }
  0x8c   : > { %821 = vmatpush3.bf16.msra.mxu0 %v258_v26 }
  0x8d   : > { %822 = vmatprep.subr.bf16.mxu0 %v257_v29  ;;  %v240_v30 = vpop.permute.xlu0 %239  ;;  %v242_v31 = vpop.permute.xlu1 %241 }
  0x8e   : > { %v256_v32 = vsel %vm255_vm1, %v240_v30, %v242_v31 }
  0x90   : > { %823 = vmatpush3.bf16.msra.mxu0 %v257_v29 }
  0x91   : > { %824 = vmatprep.subr.bf16.mxu0 %v256_v32  ;;  %v437_v33 = vpop.permute.xlu0 %436  ;;  %v439_v34 = vpop.permute.xlu1 %438 }
  0x92   : > { %v444_v36 = vsel %vm440_vm2, %v437_v33, %v439_v34 }
  0x94   : > { %825 = vmatpush3.bf16.msra.mxu0 %v256_v32 }
  0x95   : > { %842 = vmatprep.subr.bf16.mxu0 %v444_v36  ;;  %v536_v37 = vpop.permute.xlu0 %535  ;;  %v538_v39 = vpop.permute.xlu1 %537 }
  0x96   : > { %v543_v40 = vsel %vm539_vm3, %v536_v37, %v538_v39 }
  0x97   : > { %827 = vmatmul.mubr.msk.bf16.vlgmr.msra.gmra.mxu0 %vm264_vm0, %v898_v35  ;;  %854 = vmatprep.subr.bf16.mxu1 %v543_v40 }
  0x98   : > { %843 = vmatpush3.bf16.msra.mxu0 %v444_v36  ;;  %855 = vmatpush3.bf16.msra.mxu1 %v543_v40 }
  0x99   : > { %v433_v41 = vpop.permute.xlu0 %432  ;;  %850 = vmatprep.mubr.msk.bf16.mxu0 %vm264_vm0, %v900_v38  ;;  %v435_v42 = vpop.permute.xlu1 %434 }
  0x9a   : > { %v443_v43 = vsel %vm440_vm2, %v433_v41, %v435_v42 }
  0x9b   : > { %844 = vmatprep.subr.bf16.mxu0 %v443_v43 }
  0x9c   : > { %845 = vmatpush3.bf16.msra.mxu0 %v443_v43 }
  0x9d   : > { %v532_v44 = vpop.permute.xlu0 %531  ;;  %v534_v45 = vpop.permute.xlu1 %533 }
  0x9e   : > { %v542_v46 = vsel %vm539_vm3, %v532_v44, %v534_v45 }
  0x9f   : > { %856 = vmatprep.subr.bf16.mxu1 %v542_v46 }
  0xa0   : > { %857 = vmatpush3.bf16.msra.mxu1 %v542_v46 }
  0xa1   : > { %v429_v47 = vpop.permute.xlu0 %428  ;;  %v431_v48 = vpop.permute.xlu1 %430 }
  0xa2   : > { %v442_v49 = vsel %vm440_vm2, %v429_v47, %v431_v48 }
  0xa3   : > { %846 = vmatprep.subr.bf16.mxu0 %v442_v49 }
  0xa4   : > { %847 = vmatpush3.bf16.msra.mxu0 %v442_v49 }
  0xa5   : > { %v528_v50 = vpop.permute.xlu0 %527  ;;  %v530_v51 = vpop.permute.xlu1 %529 }
  0xa6   : > { %v541_v52 = vsel %vm539_vm3, %v528_v50, %v530_v51 }
  0xa7   : > { %858 = vmatprep.subr.bf16.mxu1 %v541_v52 }
  0xa8   : > { %859 = vmatpush3.bf16.msra.mxu1 %v541_v52 }
  0xa9   : > { %v425_v53 = vpop.permute.xlu0 %424  ;;  %v427_v54 = vpop.permute.xlu1 %426 }
  0xaa   : > { %v441_v55 = vsel %vm440_vm2, %v425_v53, %v427_v54 }
  0xab   : > { %848 = vmatprep.subr.bf16.mxu0 %v441_v55 }
  0xac   : > { %849 = vmatpush3.bf16.msra.mxu0 %v441_v55 }
  0xad   : > { %v524_v57 = vpop.permute.xlu0 %523  ;;  %v526_v58 = vpop.permute.xlu1 %525 }
  0xae   : > { %v540_v59 = vsel %vm539_vm3, %v524_v57, %v526_v58 }
  0xaf   : > { %851 = vmatmul.mubr.msk.bf16.vlgmr.msra.gmra.mxu0 %vm264_vm0, %v901_v56  ;;  %860 = vmatprep.subr.bf16.mxu1 %v540_v59 }
  0xb0   : > { %861 = vmatpush3.bf16.msra.mxu1 %v540_v59 }
  0xb3   : > { %863 = vmatmul.mubr.msk.bf16.vlgmr.msra.gmra.mxu1 %vm264_vm0, %v903_v60 }
  0xba   : > { %v619_v2 = vpop.permute.xlu1 %618  ;;  %v614_v11 = vpop.permute.xlu0 %613 }
  0xbe   : > { %v624_v12 = vpop.permute.xlu1 %623  ;;  %v629_v28 = vpop.permute.xlu0 %628 }
  0xe4   : > { %v840_v62 = vpop.f32.mrf.mxu1 }
  0xe6   : > { %v394_v0 = vpop.f32.mrf.mxu1 }
  0xe8   : > { %v841_v3 = vpop.f32.mrf.mxu1 }
  0xea   : > { %v397_v7 = vpop.f32.mrf.mxu1 }
 0x157   : > { %v828_v61 = vpop.f32.mrf.mxu0 }
 0x158   : > { %v403_v6 = vadd.f32 %v840_v62, %v828_v61 }
 0x159   : > { %v305_v63 = vpop.f32.mrf.mxu0 }
 0x15a   : > { %v395_v9 = vadd.f32 %v394_v0, %v305_v63 }
 0x15b   : > { %v829_v1 = vpop.f32.mrf.mxu0 }
 0x15c   : > { %v406_v15 = vadd.f32 %v841_v3, %v829_v1 }
 0x15d   : > { %v308_v4 = vpop.f32.mrf.mxu0 }
 0x15e   : > { %v398_v23 = vadd.f32 %v397_v7, %v308_v4 }
 0x16f   : > { %v852_v5 = vpop.f32.mrf.mxu0 }
 0x170   : > { %v506_v10 = vadd.f32 %v852_v5, %v403_v6 }
 0x171   : > { %v489_v8 = vpop.f32.mrf.mxu0 }
 0x172   : > { %v504_v16 = vadd.f32 %v489_v8, %v395_v9 }
 0x173   : > { %v853_v13 = vpop.f32.mrf.mxu0  ;;  %v864_v14 = vpop.f32.mrf.mxu1 }
 0x174   : > { %v605_v17 = vadd.f32 %v864_v14, %v506_v10  ;;  %v507_v19 = vadd.f32 %v853_v13, %v406_v15 }
 0x175   : > { %v588_v18 = vpop.f32.mrf.mxu1  ;;  %v492_v21 = vpop.f32.mrf.mxu0 }
 0x176   : > { %v633_v20 = vadd.f32 %v624_v12, %v605_v17  ;;  %v603_v22 = vadd.f32 %v588_v18, %v504_v16  ;;  %v505_v26 = vadd.f32 %v492_v21, %v398_v23 }
 0x177   : > { %v865_v24 = vpop.f32.mrf.mxu1 }
 0x178   : > { %v606_v25 = vadd.f32 %v865_v24, %v507_v19  ;;  %v631_v27 = vadd.f32 %v614_v11, %v603_v22  ;;  %v641_v30 = vmul.f32 0.2, %v633_v20  ;;  %vm637_vm4 = vcmp.gt.f32.partialorder %v633_v20, 0.0 }
 0x179   : > { %v591_v29 = vpop.f32.mrf.mxu1 }
 0x17a   : > { %v634_v31 = vadd.f32 %v629_v28, %v606_v25  ;;  %v604_v32 = vadd.f32 %v591_v29, %v505_v26  ;;  %v639_v34 = vmul.f32 0.2, %v631_v27  ;;  %v645_v36 = vsel %vm637_vm4, %v633_v20, %v641_v30 }
 0x17b   : > { %vm635_vm6 = vcmp.gt.f32.partialorder %v631_v27, 0.0 }
 0x17c   : > { %vm638_vm5 = vcmp.gt.f32.partialorder %v634_v31, 0.0  ;;  %v642_v33 = vmul.f32 0.2, %v634_v31  ;;  %v632_v35 = vadd.f32 %v619_v2, %v604_v32  ;;  %v643_v40 = vsel %vm635_vm6, %v631_v27, %v639_v34 }
 0x17e   : > { %v646_v37 = vsel %vm638_vm5, %v634_v31, %v642_v33  ;;  %vm636_vm7 = vcmp.gt.f32.partialorder %v632_v35, 0.0  ;;  %v640_v39 = vmul.f32 0.2, %v632_v35 }
 0x17f   : > { %v791_v38 = vpack.c.bf16 %v646_v37, %v645_v36 }
 0x180   : > { %v644_v41 = vsel %vm636_vm7, %v632_v35, %v640_v39 }
 0x181   : > { %793 = vst [vmem:[%s170_s23 + $0x8] sm:$0xff] %v791_v38   ;;  %v786_v42 = vpack.c.bf16 %v644_v41, %v643_v40 }
 0x183   : > { %787 = vst [vmem:[%s170_s23] sm:$0xff] %v786_v42  }
 0x184 PF: > { %s13_s12 = sadd.s32 1, %s910_s12  }
 0x185   : > { %p10_p4 = scmp.ge.s32.totalorder %s13_s12, 6  }
 0x187   :  { %12 = sbr.rel (!%p10_p4) target bundleno = 1 (0x1), region = 65 }

// kernel: discriminator_forward.8
= control target key start
LH: loop header
LB: loop body
LE: loop exit
PB: predicated region body
PF: predicated region fallthrough
CT: control target
= control target key end

     0   :  { %s1131_s12 = smov 0   ;;  %s1321_s0 = inlined_call_operand.vmem [shape: bf16[4,32,128], index: 0, kind: input, shape index: {}]   ;;  %s1322_s1 = inlined_call_operand.vmem [shape: f32[32,1], index: 1, kind: input, shape index: {}]   ;;  %s1323_s2 = inlined_call_operand.vmem [shape: bf16[4,128,256], index: 2, kind: input, shape index: {}]   ;;  %s1324_s3 = inlined_call_operand.vmem [shape: bf16[4,32,128], index: 3, kind: output, shape index: {}]  }
   0x1 LB: > { %s849_s13 = sadd.s32 4294967295, %s1105_s12   ;;  %p853_p0 = scmp.ge.s32.totalorder %s1105_s12, 1  ;;  %s1105_s12 = sphi %s1131_s12, %s13_s12  }
   0x2   : > { %p137_p1 = scmp.lt.s32.totalorder %s1105_s12, 5 }
   0x4   : > { %p138_p2 = pnand %p853_p0, %p137_p1 }
   0x5   : > { %p161_p3 = scmp.lt.s32.totalorder (!%p138_p2), %s849_s13, 3  ;;  %s1107_s18 = smov (!%p138_p2), 127  }
   0x6   : > { %141 = sbr.rel (%p138_p2) target bundleno = 436 (0x1b4), region = 32  ;;  %s1108_s23 = smov (!%p138_p2), 125  }
   0x7   : > { %s1109_s24 = smov (!%p138_p2), 124  }
   0xb   : > { %s1326_s13 = smov (!%p161_p3, %s849_s13), 3  ;;  %v1091_v19 = vld [vmem:[%s1321_s0 + $0x10] sm:$0xff]   ;;  %v1092_v20 = vld [vmem:[%s1321_s0] sm:$0xff]   ;;  %v1094_v26 = vld [vmem:[%s1321_s0 + $0x8] sm:$0xff]   ;;  %v1110_v28 = vmov 0   ;;  %vm321_vm0 = vcmask 1039360  }
   0xc   : > { %s908_s14 = sshll.u32 %s1326_s13, 7  ;;  %981 = vmatprep.mubr.bf16.mxu0 %v1091_v19  ;;  %1001 = vmatprep.mubr.bf16.mxu1 %v1092_v20  ;;  %v1097_v27 = vld [vmem:[%s1321_s0 + $0x30] sm:$0xff]   ;;  %v734_v29 = vld [vmem:[%s1322_s1] sm:$0xff]  ;;  %v735_v30 = vld [vmem:[%s1322_s1 + $0x8] sm:$0xff]  ;;  %vm545_vm1 = vcmask 1022976   ;;  %vm664_vm2 = vcmask 1014784  }
   0xd   : > { %s1145_s17 = scalar_lea.vmem %s1323_s2, %s908_s14  ;;  %1058 = vset.pattern.permute.xlu1 %v1110_v28  ;;  %1057 = vset.pattern.permute.xlu0 %v1110_v28  ;;  %v737_v31 = vld [vmem:[%s1322_s1 + $0x18] sm:$0xff]  ;;  %v736_v32 = vld [vmem:[%s1322_s1 + $0x10] sm:$0xff]  ;;  %v1095_v62 = vld [vmem:[%s1321_s0 + $0x20] sm:$0xff]   ;;  %s909_s20 = sshll.u32 %s1326_s13, 4 }
   0xe   : > { %v1059_v0 = vld [vmem:[%s1145_s17 + $0x70] ss:$8 sps:$4 sm:$0xff]   ;;  %v1149_v1 = vld [vmem:[%s1145_s17 + $0x60] ss:$8 sps:$4 sm:$0xff]   ;;  %v1063_v2 = vld [vmem:[%s1145_s17 + $0x74] ss:$8 sps:$4 sm:$0xff]  }
   0xf   : > { %317 = vrot.lane.b32.xlu0 %v1059_v0, %s1107_s18  ;;  %313 = vrot.lane.b32.xlu1 %v1149_v1, %s1107_s18  ;;  %v1156_v3 = vld [vmem:[%s1145_s17 + $0x64] ss:$8 sps:$4 sm:$0xff]   ;;  %v1160_v4 = vld [vmem:[%s1145_s17 + $0x50] ss:$8 sps:$4 sm:$0xff]  }
  0x10   : > { %v1165_v5 = vld [vmem:[%s1145_s17 + $0x54] ss:$8 sps:$4 sm:$0xff]   ;;  %v1170_v6 = vld [vmem:[%s1145_s17 + $0x44] ss:$8 sps:$4 sm:$0xff]   ;;  %v1173_v7 = vld [vmem:[%s1145_s17 + $0x40] ss:$8 sps:$4 sm:$0xff]  }
  0x11   : > { %v1083_v8 = vld [vmem:[%s1145_s17 + $0x70] ss:$8 sps:$4 sm:$0xff]   ;;  %v1084_v9 = vld [vmem:[%s1145_s17 + $0x60] ss:$8 sps:$4 sm:$0xff]   ;;  %v1180_v10 = vld [vmem:[%s1145_s17 + $0x34] ss:$8 sps:$4 sm:$0xff]  }
  0x12   : > { %985 = vmatprep.subr.bf16.mxu1 %v1083_v8  ;;  %v1073_v11 = vld [vmem:[%s1145_s17 + $0x30] ss:$8 sps:$4 sm:$0xff]   ;;  %v1076_v13 = vld [vmem:[%s1145_s17 + $0x20] ss:$8 sps:$4 sm:$0xff]   ;;  %v1074_v14 = vld [vmem:[%s1145_s17 + $0x24] ss:$8 sps:$4 sm:$0xff]  }
  0x13   : > { %319 = vrot.lane.b32.xlu0 %v1063_v2, %s1107_s18  ;;  %315 = vrot.lane.b32.xlu1 %v1156_v3, %s1107_s18  ;;  %v1085_v12 = vld [vmem:[%s1145_s17 + $0x50] ss:$8 sps:$4 sm:$0xff]   ;;  %v1086_v15 = vld [vmem:[%s1145_s17 + $0x40] ss:$8 sps:$4 sm:$0xff]  }
  0x14   : > { %986 = vmatpush3.bf16.msra.mxu1 %v1083_v8  ;;  %v1079_v16 = vld [vmem:[%s1145_s17 + $0x10] ss:$8 sps:$4 sm:$0xff]   ;;  %v1077_v17 = vld [vmem:[%s1145_s17 + $0x14] ss:$8 sps:$4 sm:$0xff]   ;;  %v1082_v21 = vld [vmem:[%s1145_s17] ss:$8 sps:$4 sm:$0xff]  }
  0x15   : > { %987 = vmatprep.subr.bf16.mxu1 %v1084_v9  ;;  %v1087_v18 = vld [vmem:[%s1145_s17 + $0x30] ss:$8 sps:$4 sm:$0xff]   ;;  %v1080_v22 = vld [vmem:[%s1145_s17 + $0x4] ss:$8 sps:$4 sm:$0xff]   ;;  %v1088_v23 = vld [vmem:[%s1145_s17 + $0x20] ss:$8 sps:$4 sm:$0xff]  }
  0x16   : > { %v1089_v24 = vld [vmem:[%s1145_s17 + $0x10] ss:$8 sps:$4 sm:$0xff]   ;;  %v1090_v25 = vld [vmem:[%s1145_s17] ss:$8 sps:$4 sm:$0xff]  }
  0x17   : > { %309 = vrot.lane.b32.xlu0 %v1160_v4, %s1107_s18  ;;  %311 = vrot.lane.b32.xlu1 %v1165_v5, %s1107_s18  ;;  %v1093_v59 = vld [vmem:[%s1321_s0 + $0x18] sm:$0xff]  }
  0x18   : > { %988 = vmatpush3.bf16.msra.mxu1 %v1084_v9 }
  0x19   : > { %989 = vmatprep.subr.bf16.mxu1 %v1085_v12 }
  0x1b   : > { %305 = vrot.lane.b32.xlu0 %v1173_v7, %s1107_s18  ;;  %307 = vrot.lane.b32.xlu1 %v1170_v6, %s1107_s18 }
  0x1c   : > { %990 = vmatpush3.bf16.msra.mxu1 %v1085_v12 }
  0x1d   : > { %991 = vmatprep.subr.bf16.mxu1 %v1086_v15 }
  0x1f   : > { %301 = vrot.lane.b32.xlu0 %v1073_v11, %s1107_s18  ;;  %303 = vrot.lane.b32.xlu1 %v1180_v10, %s1107_s18 }
  0x20   : > { %992 = vmatpush3.bf16.msra.mxu1 %v1086_v15 }
  0x21   : > { %993 = vmatprep.subr.bf16.mxu1 %v1087_v18 }
  0x23   : > { %297 = vrot.lane.b32.xlu0 %v1076_v13, %s1107_s18  ;;  %299 = vrot.lane.b32.xlu1 %v1074_v14, %s1107_s18 }
  0x24   : > { %994 = vmatpush3.bf16.msra.mxu1 %v1087_v18 }
  0x25   : > { %995 = vmatprep.subr.bf16.mxu1 %v1088_v23 }
  0x27   : > { %293 = vrot.lane.b32.xlu0 %v1079_v16, %s1107_s18  ;;  %295 = vrot.lane.b32.xlu1 %v1077_v17, %s1107_s18 }
  0x28   : > { %996 = vmatpush3.bf16.msra.mxu1 %v1088_v23 }
  0x29   : > { %997 = vmatprep.subr.bf16.mxu1 %v1089_v24 }
  0x2b   : > { %289 = vrot.lane.b32.xlu0 %v1082_v21, %s1107_s18  ;;  %291 = vrot.lane.b32.xlu1 %v1080_v22, %s1107_s18 }
  0x2c   : > { %998 = vmatpush3.bf16.msra.mxu1 %v1089_v24 }
  0x2d   : > { %999 = vmatprep.subr.bf16.mxu1 %v1090_v25 }
  0x2f   : > { %541 = vrot.lane.b32.xlu0 %v1059_v0, %s1108_s23  ;;  %543 = vrot.lane.b32.xlu1 %v1063_v2, %s1108_s23 }
  0x30   : > { %1000 = vmatpush3.bf16.msra.mxu1 %v1090_v25 }
  0x33   : > { %660 = vrot.lane.b32.xlu0 %v1059_v0, %s1109_s24  ;;  %662 = vrot.lane.b32.xlu1 %v1063_v2, %s1109_s24 }
  0x34   : > { %1002 = vmatmul.mubr.bf16.vlgmr.msra.gmra.mxu1 %v1094_v26 }
  0x35   : > { %1041 = vmatprep.mubr.bf16.mxu1 %v1097_v27 }
  0x37   : > { %537 = vrot.lane.b32.xlu0 %v1149_v1, %s1108_s23  ;;  %539 = vrot.lane.b32.xlu1 %v1156_v3, %s1108_s23 }
  0x3b   : > { %656 = vrot.lane.b32.xlu0 %v1149_v1, %s1109_s24  ;;  %658 = vrot.lane.b32.xlu1 %v1156_v3, %s1109_s24 }
  0x3f   : > { %533 = vrot.lane.b32.xlu0 %v1160_v4, %s1108_s23  ;;  %535 = vrot.lane.b32.xlu1 %v1165_v5, %s1108_s23 }
  0x43   : > { %652 = vrot.lane.b32.xlu0 %v1160_v4, %s1109_s24  ;;  %654 = vrot.lane.b32.xlu1 %v1165_v5, %s1109_s24 }
  0x47   : > { %529 = vrot.lane.b32.xlu0 %v1173_v7, %s1108_s23  ;;  %531 = vrot.lane.b32.xlu1 %v1170_v6, %s1108_s23 }
  0x4b   : > { %648 = vrot.lane.b32.xlu0 %v1173_v7, %s1109_s24  ;;  %650 = vrot.lane.b32.xlu1 %v1170_v6, %s1109_s24 }
  0x4f   : > { %525 = vrot.lane.b32.xlu0 %v1073_v11, %s1108_s23  ;;  %527 = vrot.lane.b32.xlu1 %v1180_v10, %s1108_s23 }
  0x53   : > { %644 = vrot.lane.b32.xlu0 %v1073_v11, %s1109_s24  ;;  %646 = vrot.lane.b32.xlu1 %v1180_v10, %s1109_s24 }
  0x57   : > { %521 = vrot.lane.b32.xlu0 %v1076_v13, %s1108_s23  ;;  %523 = vrot.lane.b32.xlu1 %v1074_v14, %s1108_s23 }
  0x5b   : > { %640 = vrot.lane.b32.xlu0 %v1076_v13, %s1109_s24  ;;  %642 = vrot.lane.b32.xlu1 %v1074_v14, %s1109_s24 }
  0x5f   : > { %517 = vrot.lane.b32.xlu0 %v1079_v16, %s1108_s23  ;;  %519 = vrot.lane.b32.xlu1 %v1077_v17, %s1108_s23 }
  0x63   : > { %636 = vrot.lane.b32.xlu0 %v1079_v16, %s1109_s24  ;;  %638 = vrot.lane.b32.xlu1 %v1077_v17, %s1109_s24 }
  0x67   : > { %513 = vrot.lane.b32.xlu0 %v1082_v21, %s1108_s23  ;;  %515 = vrot.lane.b32.xlu1 %v1080_v22, %s1108_s23  ;;  %s170_s23 = scalar_lea.vmem %s1324_s3, %s909_s20 }
  0x6b   : > { %632 = vrot.lane.b32.xlu0 %v1082_v21, %s1109_s24  ;;  %634 = vrot.lane.b32.xlu1 %v1080_v22, %s1109_s24 }
  0x6f   : > { %740 = vperm.xlu0 %1057, %v734_v29   ;;  %745 = vperm.xlu1 %1058, %v735_v30  }
  0x73   : > { %755 = vperm.xlu0 %1057, %v737_v31   ;;  %750 = vperm.xlu1 %1058, %v736_v32  }
  0x81   : > { %v318_v33 = vpop.permute.xlu0 %317  ;;  %v314_v34 = vpop.permute.xlu1 %313 }
  0x85   : > { %v320_v35 = vpop.permute.xlu0 %319  ;;  %v316_v36 = vpop.permute.xlu1 %315 }
  0x86   : > { %v329_v37 = vsel %vm321_vm0, %v318_v33, %v320_v35  ;;  %v328_v38 = vsel %vm321_vm0, %v314_v34, %v316_v36 }
  0x87   : > { %965 = vmatprep.subr.bf16.mxu0 %v329_v37 }
  0x88   : > { %966 = vmatpush3.bf16.msra.mxu0 %v329_v37 }
  0x89   : > { %967 = vmatprep.subr.bf16.mxu0 %v328_v38  ;;  %v310_v39 = vpop.permute.xlu0 %309  ;;  %v312_v40 = vpop.permute.xlu1 %311 }
  0x8a   : > { %v327_v41 = vsel %vm321_vm0, %v310_v39, %v312_v40  ;;  %v1096_v40 = vld [vmem:[%s1321_s0 + $0x28] sm:$0xff]  }
  0x8c   : > { %968 = vmatpush3.bf16.msra.mxu0 %v328_v38 }
  0x8d   : > { %969 = vmatprep.subr.bf16.mxu0 %v327_v41  ;;  %v306_v42 = vpop.permute.xlu0 %305  ;;  %v308_v43 = vpop.permute.xlu1 %307 }
  0x8e   : > { %v326_v44 = vsel %vm321_vm0, %v306_v42, %v308_v43 }
  0x90   : > { %970 = vmatpush3.bf16.msra.mxu0 %v327_v41 }
  0x91   : > { %971 = vmatprep.subr.bf16.mxu0 %v326_v44  ;;  %v302_v45 = vpop.permute.xlu0 %301  ;;  %v304_v46 = vpop.permute.xlu1 %303 }
  0x92   : > { %v325_v47 = vsel %vm321_vm0, %v302_v45, %v304_v46 }
  0x94   : > { %972 = vmatpush3.bf16.msra.mxu0 %v326_v44  ;;  %v1098_v44 = vld [vmem:[%s1321_s0 + $0x38] sm:$0xff]  }
  0x95   : > { %973 = vmatprep.subr.bf16.mxu0 %v325_v47  ;;  %v298_v48 = vpop.permute.xlu0 %297  ;;  %v300_v49 = vpop.permute.xlu1 %299 }
  0x96   : > { %v324_v50 = vsel %vm321_vm0, %v298_v48, %v300_v49 }
  0x98   : > { %974 = vmatpush3.bf16.msra.mxu0 %v325_v47 }
  0x99   : > { %975 = vmatprep.subr.bf16.mxu0 %v324_v50  ;;  %v294_v51 = vpop.permute.xlu0 %293  ;;  %v296_v52 = vpop.permute.xlu1 %295 }
  0x9a   : > { %v323_v53 = vsel %vm321_vm0, %v294_v51, %v296_v52 }
  0x9c   : > { %976 = vmatpush3.bf16.msra.mxu0 %v324_v50 }
  0x9d   : > { %977 = vmatprep.subr.bf16.mxu0 %v323_v53  ;;  %v290_v54 = vpop.permute.xlu0 %289  ;;  %v292_v55 = vpop.permute.xlu1 %291 }
  0x9e   : > { %v322_v56 = vsel %vm321_vm0, %v290_v54, %v292_v55 }
  0xa0   : > { %978 = vmatpush3.bf16.msra.mxu0 %v323_v53 }
  0xa1   : > { %979 = vmatprep.subr.bf16.mxu0 %v322_v56  ;;  %v542_v57 = vpop.permute.xlu0 %541  ;;  %v544_v58 = vpop.permute.xlu1 %543 }
  0xa2   : > { %v553_v60 = vsel %vm545_vm1, %v542_v57, %v544_v58 }
  0xa4   : > { %980 = vmatpush3.bf16.msra.mxu0 %v322_v56 }
  0xa5   : > { %1005 = vmatprep.subr.bf16.mxu0 %v553_v60  ;;  %v661_v61 = vpop.permute.xlu0 %660  ;;  %v663_v63 = vpop.permute.xlu1 %662 }
  0xa6   : > { %v672_v0 = vsel %vm664_vm2, %v661_v61, %v663_v63 }
  0xa7   : > { %982 = vmatmul.mubr.bf16.vlgmr.msra.gmra.mxu0 %v1093_v59  ;;  %1025 = vmatprep.subr.bf16.mxu1 %v672_v0 }
  0xa8   : > { %1006 = vmatpush3.bf16.msra.mxu0 %v553_v60  ;;  %1026 = vmatpush3.bf16.msra.mxu1 %v672_v0 }
  0xa9   : > { %v538_v1 = vpop.permute.xlu0 %537  ;;  %1021 = vmatprep.mubr.bf16.mxu0 %v1095_v62  ;;  %v540_v2 = vpop.permute.xlu1 %539 }
  0xaa   : > { %v552_v3 = vsel %vm545_vm1, %v538_v1, %v540_v2 }
  0xab   : > { %1007 = vmatprep.subr.bf16.mxu0 %v552_v3 }
  0xac   : > { %1008 = vmatpush3.bf16.msra.mxu0 %v552_v3 }
  0xad   : > { %v657_v4 = vpop.permute.xlu0 %656  ;;  %v659_v5 = vpop.permute.xlu1 %658 }
  0xae   : > { %v671_v6 = vsel %vm664_vm2, %v657_v4, %v659_v5 }
  0xaf   : > { %1027 = vmatprep.subr.bf16.mxu1 %v671_v6 }
  0xb0   : > { %1028 = vmatpush3.bf16.msra.mxu1 %v671_v6 }
  0xb1   : > { %v534_v7 = vpop.permute.xlu0 %533  ;;  %v536_v8 = vpop.permute.xlu1 %535 }
  0xb2   : > { %v551_v9 = vsel %vm545_vm1, %v534_v7, %v536_v8 }
  0xb3   : > { %1009 = vmatprep.subr.bf16.mxu0 %v551_v9 }
  0xb4   : > { %1010 = vmatpush3.bf16.msra.mxu0 %v551_v9 }
  0xb5   : > { %v653_v10 = vpop.permute.xlu0 %652  ;;  %v655_v11 = vpop.permute.xlu1 %654 }
  0xb6   : > { %v670_v12 = vsel %vm664_vm2, %v653_v10, %v655_v11 }
  0xb7   : > { %1029 = vmatprep.subr.bf16.mxu1 %v670_v12 }
  0xb8   : > { %1030 = vmatpush3.bf16.msra.mxu1 %v670_v12 }
  0xb9   : > { %v530_v13 = vpop.permute.xlu0 %529  ;;  %v532_v14 = vpop.permute.xlu1 %531 }
  0xba   : > { %v550_v15 = vsel %vm545_vm1, %v530_v13, %v532_v14 }
  0xbb   : > { %1011 = vmatprep.subr.bf16.mxu0 %v550_v15 }
  0xbc   : > { %1012 = vmatpush3.bf16.msra.mxu0 %v550_v15 }
  0xbd   : > { %v649_v16 = vpop.permute.xlu0 %648  ;;  %v651_v17 = vpop.permute.xlu1 %650 }
  0xbe   : > { %v669_v18 = vsel %vm664_vm2, %v649_v16, %v651_v17 }
  0xbf   : > { %1031 = vmatprep.subr.bf16.mxu1 %v669_v18 }
  0xc0   : > { %1032 = vmatpush3.bf16.msra.mxu1 %v669_v18 }
  0xc1   : > { %v526_v19 = vpop.permute.xlu0 %525  ;;  %v528_v20 = vpop.permute.xlu1 %527 }
  0xc2   : > { %v549_v21 = vsel %vm545_vm1, %v526_v19, %v528_v20 }
  0xc3   : > { %1013 = vmatprep.subr.bf16.mxu0 %v549_v21 }
  0xc4   : > { %1014 = vmatpush3.bf16.msra.mxu0 %v549_v21 }
  0xc5   : > { %v645_v22 = vpop.permute.xlu0 %644  ;;  %v647_v23 = vpop.permute.xlu1 %646 }
  0xc6   : > { %v668_v24 = vsel %vm664_vm2, %v645_v22, %v647_v23 }
  0xc7   : > { %1033 = vmatprep.subr.bf16.mxu1 %v668_v24 }
  0xc8   : > { %1034 = vmatpush3.bf16.msra.mxu1 %v668_v24 }
  0xc9   : > { %v522_v25 = vpop.permute.xlu0 %521  ;;  %v524_v26 = vpop.permute.xlu1 %523 }
  0xca   : > { %v548_v27 = vsel %vm545_vm1, %v522_v25, %v524_v26 }
  0xcb   : > { %1015 = vmatprep.subr.bf16.mxu0 %v548_v27 }
  0xcc   : > { %1016 = vmatpush3.bf16.msra.mxu0 %v548_v27 }
  0xcd   : > { %v641_v28 = vpop.permute.xlu0 %640  ;;  %v643_v29 = vpop.permute.xlu1 %642 }
  0xce   : > { %v667_v30 = vsel %vm664_vm2, %v641_v28, %v643_v29 }
  0xcf   : > { %1035 = vmatprep.subr.bf16.mxu1 %v667_v30 }
  0xd0   : > { %1036 = vmatpush3.bf16.msra.mxu1 %v667_v30 }
  0xd1   : > { %v518_v31 = vpop.permute.xlu0 %517  ;;  %v520_v32 = vpop.permute.xlu1 %519 }
  0xd2   : > { %v547_v33 = vsel %vm545_vm1, %v518_v31, %v520_v32 }
  0xd3   : > { %1017 = vmatprep.subr.bf16.mxu0 %v547_v33 }
  0xd4   : > { %1018 = vmatpush3.bf16.msra.mxu0 %v547_v33 }
  0xd5   : > { %v637_v34 = vpop.permute.xlu0 %636  ;;  %v639_v35 = vpop.permute.xlu1 %638 }
  0xd6   : > { %v666_v36 = vsel %vm664_vm2, %v637_v34, %v639_v35 }
  0xd7   : > { %1037 = vmatprep.subr.bf16.mxu1 %v666_v36 }
  0xd8   : > { %1038 = vmatpush3.bf16.msra.mxu1 %v666_v36 }
  0xd9   : > { %v514_v37 = vpop.permute.xlu0 %513  ;;  %v516_v38 = vpop.permute.xlu1 %515 }
  0xda   : > { %v546_v39 = vsel %vm545_vm1, %v514_v37, %v516_v38 }
  0xdb   : > { %1019 = vmatprep.subr.bf16.mxu0 %v546_v39 }
  0xdc   : > { %1020 = vmatpush3.bf16.msra.mxu0 %v546_v39 }
  0xdd   : > { %v633_v41 = vpop.permute.xlu0 %632  ;;  %v635_v42 = vpop.permute.xlu1 %634 }
  0xde   : > { %v665_v43 = vsel %vm664_vm2, %v633_v41, %v635_v42 }
  0xdf   : > { %1022 = vmatmul.mubr.bf16.vlgmr.msra.gmra.mxu0 %v1096_v40  ;;  %1039 = vmatprep.subr.bf16.mxu1 %v665_v43 }
  0xe0   : > { %1040 = vmatpush3.bf16.msra.mxu1 %v665_v43 }
  0xe3   : > { %1042 = vmatmul.mubr.bf16.vlgmr.msra.gmra.mxu1 %v1098_v44 }
  0xea   : > { %v746_v50 = vpop.permute.xlu1 %745  ;;  %v741_v59 = vpop.permute.xlu0 %740 }
  0xee   : > { %v751_v60 = vpop.permute.xlu1 %750  ;;  %v756_v12 = vpop.permute.xlu0 %755 }
  0xf4   : > { %v1003_v46 = vpop.f32.mrf.mxu1 }
  0xf6   : > { %v481_v48 = vpop.f32.mrf.mxu1 }
  0xf8   : > { %v1004_v51 = vpop.f32.mrf.mxu1 }
  0xfa   : > { %v484_v55 = vpop.f32.mrf.mxu1 }
 0x167   : > { %v983_v45 = vpop.f32.mrf.mxu0 }
 0x168   : > { %v490_v54 = vadd.f32 %v1003_v46, %v983_v45 }
 0x169   : > { %v372_v47 = vpop.f32.mrf.mxu0 }
 0x16a   : > { %v482_v57 = vadd.f32 %v481_v48, %v372_v47 }
 0x16b   : > { %v984_v49 = vpop.f32.mrf.mxu0 }
 0x16c   : > { %v493_v63 = vadd.f32 %v1004_v51, %v984_v49 }
 0x16d   : > { %v375_v52 = vpop.f32.mrf.mxu0 }
 0x16e   : > { %v485_v7 = vadd.f32 %v484_v55, %v375_v52 }
 0x19f   : > { %v1023_v53 = vpop.f32.mrf.mxu0 }
 0x1a0   : > { %v613_v58 = vadd.f32 %v1023_v53, %v490_v54 }
 0x1a1   : > { %v596_v56 = vpop.f32.mrf.mxu0 }
 0x1a2   : > { %v611_v0 = vadd.f32 %v596_v56, %v482_v57 }
 0x1a3   : > { %v1024_v61 = vpop.f32.mrf.mxu0  ;;  %v1043_v62 = vpop.f32.mrf.mxu1 }
 0x1a4   : > { %v732_v1 = vadd.f32 %v1043_v62, %v613_v58  ;;  %v614_v3 = vadd.f32 %v1024_v61, %v493_v63 }
 0x1a5   : > { %v715_v2 = vpop.f32.mrf.mxu1  ;;  %v599_v5 = vpop.f32.mrf.mxu0 }
 0x1a6   : > { %v760_v4 = vadd.f32 %v751_v60, %v732_v1  ;;  %v730_v6 = vadd.f32 %v715_v2, %v611_v0  ;;  %v612_v10 = vadd.f32 %v599_v5, %v485_v7 }
 0x1a7   : > { %v1044_v8 = vpop.f32.mrf.mxu1 }
 0x1a8   : > { %v733_v9 = vadd.f32 %v1044_v8, %v614_v3  ;;  %v758_v11 = vadd.f32 %v741_v59, %v730_v6  ;;  %v768_v14 = vmul.f32 0.2, %v760_v4  ;;  %vm764_vm3 = vcmp.gt.f32.partialorder %v760_v4, 0.0 }
 0x1a9   : > { %v718_v13 = vpop.f32.mrf.mxu1 }
 0x1aa   : > { %v761_v15 = vadd.f32 %v756_v12, %v733_v9  ;;  %v731_v16 = vadd.f32 %v718_v13, %v612_v10  ;;  %v766_v18 = vmul.f32 0.2, %v758_v11  ;;  %v772_v20 = vsel %vm764_vm3, %v760_v4, %v768_v14 }
 0x1ab   : > { %vm762_vm5 = vcmp.gt.f32.partialorder %v758_v11, 0.0 }
 0x1ac   : > { %vm765_vm4 = vcmp.gt.f32.partialorder %v761_v15, 0.0  ;;  %v769_v17 = vmul.f32 0.2, %v761_v15  ;;  %v759_v19 = vadd.f32 %v746_v50, %v731_v16  ;;  %v770_v24 = vsel %vm762_vm5, %v758_v11, %v766_v18 }
 0x1ae   : > { %v773_v21 = vsel %vm765_vm4, %v761_v15, %v769_v17  ;;  %vm763_vm6 = vcmp.gt.f32.partialorder %v759_v19, 0.0  ;;  %v767_v23 = vmul.f32 0.2, %v759_v19 }
 0x1af   : > { %v922_v22 = vpack.c.bf16 %v773_v21, %v772_v20 }
 0x1b0   : > { %v771_v25 = vsel %vm763_vm6, %v759_v19, %v767_v23 }
 0x1b1   : > { %924 = vst [vmem:[%s170_s23 + $0x8] sm:$0xff] %v922_v22   ;;  %v917_v26 = vpack.c.bf16 %v771_v25, %v770_v24 }
 0x1b3   : > { %918 = vst [vmem:[%s170_s23] sm:$0xff] %v917_v26  }
 0x1b4 PF: > { %s13_s12 = sadd.s32 1, %s1105_s12  }
 0x1b5   : > { %p10_p4 = scmp.ge.s32.totalorder %s13_s12, 6  }
 0x1b7   :  { %12 = sbr.rel (!%p10_p4) target bundleno = 1 (0x1), region = 65 }

// kernel: discriminator_forward.9
= control target key start
LH: loop header
LB: loop body
LE: loop exit
PB: predicated region body
PF: predicated region fallthrough
CT: control target
= control target key end

     0   :  { %v347_v0 = vmov 0.0   ;;  %vm348_vm0 = vmmov 0   ;;  %vm216_vm1 = vcmask 1043456   ;;  %vm158_vm2 = vcmask 130048   ;;  %s437_s1 = inlined_call_operand.vmem [shape: bf16[128,16], index: 1, kind: input, shape index: {}]   ;;  %s438_s0 = inlined_call_operand.vmem [shape: bf16[4,128], index: 0, kind: input, shape index: {}]   ;;  %s439_s3 = inlined_call_operand.vmem [shape: bf16[16,8], index: 3, kind: input, shape index: {}]   ;;  %s440_s2 = inlined_call_operand.vmem [shape: f32[1,16], index: 2, kind: input, shape index: {}]   ;;  %s441_s5 = inlined_call_operand.vmem [shape: bf16[8,1], index: 5, kind: input, shape index: {}]   ;;  %s442_s6 = inlined_call_operand.<no memory space> [shape: f32[1,1], index: 6, kind: input, shape index: {}]   ;;  %s443_s4 = inlined_call_operand.vmem [shape: f32[1,8], index: 4, kind: input, shape index: {}]   ;;  %s444_s7 = inlined_call_operand.vmem [shape: f32[4,1], index: 7, kind: output, shape index: {}]  }
   0x1   :  { %300 = vmatprep.subr.bf16.mxu0 %v347_v0  ;;  %v334_v1 = vld [vmem:[%s437_s1 + $0x38] sm:$0xff]   ;;  %316 = vmatprep.mubr.msk.bf16.mxu0 %vm348_vm0, %v347_v0  ;;  %v335_v2 = vld [vmem:[%s437_s1 + $0x30] sm:$0xff]   ;;  %v336_v3 = vld [vmem:[%s437_s1 + $0x28] sm:$0xff]   ;;  %v12_v21 = vstv %s442_s6  ;;  %vm212_vm3 = vcmask 64512   ;;  %vm266_vm4 = vcmask 3072  }
   0x2   :  { %320 = vmatprep.subr.bf16.mxu1 %v347_v0  ;;  %322 = vmatprep.mubr.msk.bf16.mxu1 %vm348_vm0, %v347_v0  ;;  %v337_v4 = vld [vmem:[%s437_s1 + $0x20] sm:$0xff]   ;;  %v338_v5 = vld [vmem:[%s437_s1 + $0x18] sm:$0xff]   ;;  %v339_v6 = vld [vmem:[%s437_s1 + $0x10] sm:$0xff]   ;;  %13 = vst [vmem:[#allocation2] sm:$0x1] %v12_v21 }
   0x3   :  { %301 = vmatpush3.bf16.msra.mxu0 %v334_v1  ;;  %v340_v7 = vld [vmem:[%s437_s1 + $0x8] sm:$0xff]   ;;  %v341_v8 = vld [vmem:[%s437_s1] sm:$0xff]  }
   0x4   :  { %302 = vmatprep.subr.bf16.mxu0 %v347_v0  ;;  %v29_v9 = vld [vmem:[%s438_s0] sm:$0x3] }
   0x5   :  { %v342_v10 = vld [vmem:[%s439_s3] sm:$0xff]  }
   0x6   :  { %321 = vmatpush3.bf16.msra.mxu1 %v342_v10  ;;  %v272_v11 = vld [vmem:[%s440_s2] ss:$0 sm:$0xff] }
   0x7   :  { %303 = vmatpush3.bf16.msra.mxu0 %v335_v2  ;;  %326 = vmatprep.subr.bf16.mxu1 %v347_v0  ;;  %v204_v15 = vld [vmem:[%s441_s5] sm:$0xf] }
   0x8   :  { %304 = vmatprep.subr.bf16.mxu0 %v347_v0  ;;  %v218_v19 = vsel %vm216_vm1, %v204_v15, 0  ;;  %v281_v22 = vld [vmem:[%s443_s4] ss:$0 sm:$0xff] }
   0x9   :  { %v284_v30 = vld [vmem:[#allocation2] ss:$0 sm:$0xff] }
   0xb   :  { %305 = vmatpush3.bf16.msra.mxu0 %v336_v3 }
   0xc   :  { %306 = vmatprep.subr.bf16.mxu0 %v347_v0 }
   0xf   :  { %307 = vmatpush3.bf16.msra.mxu0 %v337_v4 }
  0x10   :  { %308 = vmatprep.subr.bf16.mxu0 %v347_v0 }
  0x13   :  { %309 = vmatpush3.bf16.msra.mxu0 %v338_v5 }
  0x14   :  { %310 = vmatprep.subr.bf16.mxu0 %v347_v0 }
  0x17   :  { %311 = vmatpush3.bf16.msra.mxu0 %v339_v6 }
  0x18   :  { %312 = vmatprep.subr.bf16.mxu0 %v347_v0 }
  0x1b   :  { %313 = vmatpush3.bf16.msra.mxu0 %v340_v7 }
  0x1c   :  { %314 = vmatprep.subr.bf16.mxu0 %v347_v0 }
  0x1f   :  { %315 = vmatpush3.bf16.msra.mxu0 %v341_v8 }
  0x22   :  { %317 = vmatmul.mubr.bf16.vlgmr.msra.gmra.mxu0 %v29_v9 }
  0xe2   :  { %v135_v12 = vpop.f32.mrf.mxu0 }
  0xe3   :  { %v136_v13 = vadd.f32 %v272_v11, %v135_v12 }
  0xe4   :  { %v318_v14 = vpop.f32.mrf.mxu0 }
  0xe5   :  { %v141_v16 = vmax.f32 %v136_v13, 0.0 }
  0xe6   :  { %v138_v17 = vpop.f32.mrf.mxu0 }
  0xe7   :  { %v142_v18 = vpack.c.bf16 %v141_v16, %v141_v16 }
  0xe8   :  { %v319_v20 = vpop.f32.mrf.mxu0 }
  0xe9   :  { %323 = vmatmul.mubr.msk.bf16.vlgmr.msra.gmra.mxu1 %vm158_vm2, %v142_v18 }
  0xea   :  { %327 = vmatpush3.bf16.msra.mxu1 %v218_v19  ;;  %328 = vmatprep.mubr.msk.bf16.mxu1 %vm348_vm0, %v347_v0 }
 0x1a9   :  { %v196_v23 = vpop.f32.mrf.mxu1 }
 0x1aa   :  { %v197_v24 = vadd.f32 %v281_v22, %v196_v23 }
 0x1ab   :  { %v324_v25 = vpop.f32.mrf.mxu1 }
 0x1ac   :  { %v202_v26 = vmax.f32 %v197_v24, 0.0 }
 0x1ad   :  { %v199_v27 = vpop.f32.mrf.mxu1 }
 0x1ae   :  { %v203_v28 = vpack.c.bf16 %v202_v26, %v202_v26 }
 0x1af   :  { %v325_v29 = vpop.f32.mrf.mxu1 }
 0x1b0   :  { %329 = vmatmul.mubr.msk.bf16.vlgmr.msra.gmra.mxu1 %vm212_vm3, %v203_v28 }
 0x270   :  { %v254_v31 = vpop.f32.mrf.mxu1 }
 0x271   :  { %v255_v32 = vadd.f32 %v284_v30, %v254_v31 }
 0x272   :  { %v330_v33 = vpop.f32.mrf.mxu1 }
 0x273   :  { %v286_v34 = vmul.f32 -1.442695, %v255_v32 }
 0x274   :  { %v257_v35 = vpop.f32.mrf.mxu1 }
 0x275   :  { %343 = vpow2.f32 %v286_v34 }
 0x276   :  { %v331_v36 = vpop.f32.mrf.mxu1 }
 0x282   :  { %v344_v37 = vpop.eup %343 }
 0x283   :  { %v263_v38 = vadd.f32 1.0, %v344_v37 }
 0x285   :  { %345 = vrcp.f32 %v263_v38 }
 0x292   :  { %v346_v39 = vpop.eup %345 }
 0x293   :  { %267 = vst.msk [vmem:[%s444_s7] sm:$0xf] %vm266_vm4, %v346_v39 }

</bundles_post_ra>
